<compile_context>
chip_gen: v7x
topology: tpu7x:2x2x1
jax: 0.10.0
libtpu: 0.0.40
codegen_flags: <defaults>
</compile_context>

<pallas_src>
import functools
import math

import jax
import jax.numpy as jnp
from jax.experimental import pallas as pl
from jax.experimental.pallas import tpu as pltpu


def _round_up(n, m):
    return ((n + m - 1) // m) * m


# ----------------------------- Pallas kernel ------------------------------ #

def _fused_matmul_bias_act_kernel(x_ref, w_ref, b_ref, o_ref, *, activation):
    # x_ref: [TM, K_pad] bf16 patches, w_ref: [K_pad, N_pad] bf16,
    # b_ref: [1, N_pad] f32.  MXU matmul with f32 accumulation.
    acc = jnp.dot(x_ref[...], w_ref[...], preferred_element_type=jnp.float32)
    acc = acc + b_ref[...]
    if activation == "relu":
        acc = jnp.maximum(acc, 0.0)
    elif activation == "leaky_relu":
        acc = jnp.where(acc >= 0.0, acc, 0.01 * acc)  # PyTorch default slope
    elif activation == "sigmoid":
        # exp -> EUP, approx reciprocal -> EUP: keeps VALU slots free.
        acc = pl.reciprocal(1.0 + jnp.exp(-acc), approx=True)
    o_ref[...] = acc.astype(o_ref.dtype)


def pallas_matmul_bias_act(x, w, b, activation, out_dtype=jnp.float32):
    """act(x @ w + b).  x: [M, K], w: [K, Cout], b: [Cout] -> [M, Cout]."""
    M, K = x.shape
    K2, Cout = w.shape
    assert K == K2

    # Lane-dense output (multiple of 128), sublane-clean K (multiple of 8).
    K_pad = _round_up(K, 8)
    N_pad = _round_up(Cout, 128)
    # Tile M for pipelining; TM must be a multiple of 8.
    TM = min(512, _round_up(M, 8))
    M_pad = _round_up(M, TM)

    x_p = jnp.pad(x.astype(jnp.bfloat16), ((0, M_pad - M), (0, K_pad - K)))
    w_p = jnp.pad(w.astype(jnp.bfloat16), ((0, K_pad - K), (0, N_pad - Cout)))
    b_p = jnp.pad(b.astype(jnp.float32), (0, N_pad - Cout)).reshape(1, N_pad)

    kernel = functools.partial(_fused_matmul_bias_act_kernel,
                               activation=activation)
    out = pl.pallas_call(
        kernel,
        grid=(M_pad // TM,),
        out_shape=jax.ShapeDtypeStruct((M_pad, N_pad), out_dtype),
        in_specs=[
            pl.BlockSpec((TM, K_pad), lambda i: (i, 0)),     # patches: tiled M
            pl.BlockSpec((K_pad, N_pad), lambda i: (0, 0)),  # weights: resident
            pl.BlockSpec((1, N_pad), lambda i: (0, 0)),      # bias: resident
        ],
        out_specs=pl.BlockSpec((TM, N_pad), lambda i: (i, 0)),
        compiler_params=pltpu.CompilerParams(
            dimension_semantics=("parallel",),       # megacore on v7x
            vmem_limit_bytes=32 * 1024 * 1024,       # safe on v7x's 64 MiB VMEM
        ),
    )(x_p, w_p, b_p)
    return out[:M, :Cout]


# ------------------------------ JAX glue (NHWC) ---------------------------- #

def _im2col_nhwc(x, k, stride, padding):
    """x: [N, H, W, C] -> patches [N*H_out*W_out, k*k*C] ordered (kh, kw, C)."""
    N, H, W, C = x.shape
    xp = jnp.pad(x, ((0, 0), (padding, padding), (padding, padding), (0, 0)))
    H_out = (H + 2 * padding - k) // stride + 1
    W_out = (W + 2 * padding - k) // stride + 1
    patches = []
    for kh in range(k):
        for kw in range(k):
            patches.append(
                xp[:, kh:kh + stride * (H_out - 1) + 1:stride,
                       kw:kw + stride * (W_out - 1) + 1:stride, :]
            )
    cols = jnp.stack(patches, axis=3)                 # [N, Ho, Wo, k*k, C]
    cols = cols.reshape(N * H_out * W_out, k * k * C)
    return cols, H_out, W_out


def conv2d_nhwc(x, W, b, stride, padding, activation, out_dtype=jnp.float32):
    """PyTorch-semantics Conv2d on NHWC input. W: [Cout, Cin, k, k]."""
    # TODO(synk): patch gather / full-net fusion could move inside the kernel
    # (in-VMEM shifted row windows) to cut the im2col HBM round-trip further.
    Cout, Cin, k, _ = W.shape
    cols, H_out, W_out = _im2col_nhwc(x, k, stride, padding)
    w2d = W.transpose(2, 3, 1, 0).reshape(k * k * Cin, Cout)  # (kh,kw,Cin) rows
    out = pallas_matmul_bias_act(cols, w2d, b, activation, out_dtype)
    N = x.shape[0]
    return out.reshape(N, H_out, W_out, Cout)


def conv_transpose2d_nhwc(x, Wt, b, stride, padding, output_padding, activation,
                          out_dtype=jnp.float32):
    """PyTorch-semantics ConvTranspose2d on NHWC input. Wt: [Cin, Cout, k, k]."""
    Cin, Cout, k, _ = Wt.shape
    N, H, W, C = x.shape
    # zero-dilate by stride
    H_d = H + (H - 1) * (stride - 1)
    W_d = W + (W - 1) * (stride - 1)
    xd = jnp.zeros((N, H_d, W_d, C), x.dtype).at[:, ::stride, ::stride, :].set(x)
    # pad: (k-1-p) low, (k-1-p+output_padding) high
    pad_lo = k - 1 - padding
    pad_hi = k - 1 - padding + output_padding
    assert pad_lo >= 0 and pad_hi >= 0, "padding > k-1 not supported here"
    xp = jnp.pad(xd, ((0, 0), (pad_lo, pad_hi), (pad_lo, pad_hi), (0, 0)))
    # equivalent forward-conv weight: flip spatially, swap in/out channels
    W_eq = jnp.flip(Wt, axis=(2, 3)).transpose(1, 0, 2, 3)  # [Cout, Cin, k, k]
    return conv2d_nhwc(xp, W_eq, b, stride=1, padding=0,
                       activation=activation, out_dtype=out_dtype)


def auto_encoder_forward(x_nchw, params):
    s, p = 2, 1
    x = x_nchw.transpose(0, 2, 3, 1)  # NCHW -> NHWC once at entry
    # encoder (intermediates stored bf16 -- matmul inputs are bf16 anyway)
    x = conv2d_nhwc(x, params["enc1_w"], params["enc1_b"], s, p, "relu", jnp.bfloat16)
    x = conv2d_nhwc(x, params["enc2_w"], params["enc2_b"], s, p, "relu", jnp.bfloat16)
    x = conv2d_nhwc(x, params["enc3_w"], params["enc3_b"], s, p, "leaky_relu", jnp.bfloat16)
    # decoder
    x = conv_transpose2d_nhwc(x, params["dec1_w"], params["dec1_b"], s, p, 1, "relu", jnp.bfloat16)
    x = conv_transpose2d_nhwc(x, params["dec2_w"], params["dec2_b"], s, p, 1, "relu", jnp.bfloat16)
    x = conv_transpose2d_nhwc(x, params["dec3_w"], params["dec3_b"], s, p, 1, "sigmoid", jnp.float32)
    return x.transpose(0, 3, 1, 2)    # NHWC -> NCHW once at exit


# --------------------------- deterministic init ---------------------------- #

def _init_conv(key, cout, cin, k):
    wk, bk = jax.random.split(key)
    bound = 1.0 / math.sqrt(cin * k * k)
    w = jax.random.uniform(wk, (cout, cin, k, k), jnp.float32, -bound, bound)
    b = jax.random.uniform(bk, (cout,), jnp.float32, -bound, bound)
    return w, b


def _init_convT(key, cin, cout, k):
    wk, bk = jax.random.split(key)
    bound = 1.0 / math.sqrt(cout * k * k)
    w = jax.random.uniform(wk, (cin, cout, k, k), jnp.float32, -bound, bound)
    b = jax.random.uniform(bk, (cout,), jnp.float32, -bound, bound)
    return w, b


if __name__ == "__main__":
    latent_size = 8
    input_channels = 3
    hidden_layer_1 = 32
    hidden_layer_2 = 16
    kernel_size = 3

    key = jax.random.PRNGKey(0)
    keys = jax.random.split(key, 7)

    params = {}
    params["enc1_w"], params["enc1_b"] = _init_conv(keys[0], hidden_layer_1, input_channels, kernel_size)
    params["enc2_w"], params["enc2_b"] = _init_conv(keys[1], hidden_layer_2, hidden_layer_1, kernel_size)
    params["enc3_w"], params["enc3_b"] = _init_conv(keys[2], latent_size, hidden_layer_2, kernel_size)
    params["dec1_w"], params["dec1_b"] = _init_convT(keys[3], latent_size, hidden_layer_2, kernel_size)
    params["dec2_w"], params["dec2_b"] = _init_convT(keys[4], hidden_layer_2, hidden_layer_1, kernel_size)
    params["dec3_w"], params["dec3_b"] = _init_convT(keys[5], hidden_layer_1, input_channels, kernel_size)

    x = jax.random.normal(keys[6], (2, input_channels, 16, 16), jnp.float32)

    out = jax.jit(auto_encoder_forward)(x, params)
    out = jax.block_until_ready(out)

    assert out.shape == x.shape, (out.shape, x.shape)
    assert bool(jnp.all(jnp.isfinite(out)))
    # sigmoid range (small tolerance for approx-EUP reciprocal)
    assert bool(jnp.all((out >= -1e-3) & (out <= 1.0 + 1e-3)))
    print("KERNEL_OK")
</pallas_src>

<mosaic_0001>
module attributes {stable_mosaic.version = 11 : i64} {
  func.func @_fused_matmul_bias_act_kernel(%arg0: i32, %arg1: memref<128x32xbf16, #tpu.memory_space<vmem>>, %arg2: memref<32x128xbf16, #tpu.memory_space<vmem>>, %arg3: memref<1x128xf32, #tpu.memory_space<vmem>>, %arg4: memref<128x128xbf16, #tpu.memory_space<vmem>>) attributes {dimension_semantics = [#tpu.dimension_semantics<parallel>], iteration_bounds = array<i64: 1>, scalar_prefetch = 0 : i64, scratch_operands = 0 : i64, tpu.core_type = #tpu.core_type<tc>, window_params = [{transform_indices = @transform_0, window_bounds = array<i64: 128, 32>}, {pipeline_mode = #tpu.pipeline_mode<synchronous>, transform_indices = @transform_1, window_bounds = array<i64: 32, 128>}, {pipeline_mode = #tpu.pipeline_mode<synchronous>, transform_indices = @transform_2, window_bounds = array<i64: 1, 128>}, {transform_indices = @transform_3, window_bounds = array<i64: 128, 128>}]} {
    %c0 = arith.constant 0 : index
    %c0_0 = arith.constant 0 : index
    %0 = vector.load %arg1[%c0, %c0_0] : memref<128x32xbf16, #tpu.memory_space<vmem>>, vector<128x32xbf16>
    %c0_1 = arith.constant 0 : index
    %c0_2 = arith.constant 0 : index
    %1 = vector.load %arg2[%c0_1, %c0_2] : memref<32x128xbf16, #tpu.memory_space<vmem>>, vector<32x128xbf16>
    %cst = arith.constant dense<0.000000e+00> : vector<128x128xf32>
    %2 = tpu.matmul %0, %1, %cst {dimension_numbers = #tpu.dot_dimension_numbers<[1], [0], [0], [1], [0, 0, 1, 1], [], []>} : vector<128x32xbf16>, vector<32x128xbf16>, vector<128x128xf32> -> vector<128x128xf32>
    %c0_3 = arith.constant 0 : index
    %c0_4 = arith.constant 0 : index
    %3 = vector.load %arg3[%c0_3, %c0_4] : memref<1x128xf32, #tpu.memory_space<vmem>>, vector<1x128xf32>
    %4 = vector.broadcast %3 : vector<1x128xf32> to vector<128x128xf32>
    %5 = arith.addf %2, %4 : vector<128x128xf32>
    %cst_5 = arith.constant 0.000000e+00 : f32
    %6 = vector.broadcast %cst_5 : f32 to vector<128x128xf32>
    %7 = arith.maximumf %5, %6 : vector<128x128xf32>
    %8 = arith.truncf %7 : vector<128x128xf32> to vector<128x128xbf16>
    %c0_6 = arith.constant 0 : index
    %c0_7 = arith.constant 0 : index
    %9 = vector.load %arg4[%c0_6, %c0_7] : memref<128x128xbf16, #tpu.memory_space<vmem>>, vector<128x128xbf16>
    tpu.vector_store %arg4[%c0_6, %c0_7], %8 {strides = array<i32>} : memref<128x128xbf16, #tpu.memory_space<vmem>>, vector<128x128xbf16>,
    return
  }
  func.func @transform_0(%arg0: i32) -> (i32, i32) {
    %c0_i32 = arith.constant 0 : i32
    %c0_i32_0 = arith.constant 0 : i32
    return %arg0, %c0_i32 : i32, i32
  }
  func.func @transform_1(%arg0: i32) -> (i32, i32) {
    %c0_i32 = arith.constant 0 : i32
    %c0_i32_0 = arith.constant 0 : i32
    %c0_i32_1 = arith.constant 0 : i32
    return %c0_i32, %c0_i32_0 : i32, i32
  }
  func.func @transform_2(%arg0: i32) -> (i32, i32) {
    %c0_i32 = arith.constant 0 : i32
    %c0_i32_0 = arith.constant 0 : i32
    %c0_i32_1 = arith.constant 0 : i32
    return %c0_i32, %c0_i32_0 : i32, i32
  }
  func.func @transform_3(%arg0: i32) -> (i32, i32) {
    %c0_i32 = arith.constant 0 : i32
    %c0_i32_0 = arith.constant 0 : i32
    return %arg0, %c0_i32 : i32, i32
  }
}

module attributes {stable_mosaic.version = 11 : i64} {
  func.func @_fused_matmul_bias_act_kernel(%arg0: i32, %arg1: memref<32x288xbf16, #tpu.memory_space<vmem>>, %arg2: memref<288x128xbf16, #tpu.memory_space<vmem>>, %arg3: memref<1x128xf32, #tpu.memory_space<vmem>>, %arg4: memref<32x128xbf16, #tpu.memory_space<vmem>>) attributes {dimension_semantics = [#tpu.dimension_semantics<parallel>], iteration_bounds = array<i64: 1>, scalar_prefetch = 0 : i64, scratch_operands = 0 : i64, tpu.core_type = #tpu.core_type<tc>, window_params = [{transform_indices = @transform_0, window_bounds = array<i64: 32, 288>}, {pipeline_mode = #tpu.pipeline_mode<synchronous>, transform_indices = @transform_1, window_bounds = array<i64: 288, 128>}, {pipeline_mode = #tpu.pipeline_mode<synchronous>, transform_indices = @transform_2, window_bounds = array<i64: 1, 128>}, {transform_indices = @transform_3, window_bounds = array<i64: 32, 128>}]} {
    %c0 = arith.constant 0 : index
    %c0_0 = arith.constant 0 : index
    %0 = vector.load %arg1[%c0, %c0_0] : memref<32x288xbf16, #tpu.memory_space<vmem>>, vector<32x288xbf16>
    %c0_1 = arith.constant 0 : index
    %c0_2 = arith.constant 0 : index
    %1 = vector.load %arg2[%c0_1, %c0_2] : memref<288x128xbf16, #tpu.memory_space<vmem>>, vector<288x128xbf16>
    %cst = arith.constant dense<0.000000e+00> : vector<32x128xf32>
    %2 = tpu.matmul %0, %1, %cst {dimension_numbers = #tpu.dot_dimension_numbers<[1], [0], [0], [1], [0, 0, 1, 1], [], []>} : vector<32x288xbf16>, vector<288x128xbf16>, vector<32x128xf32> -> vector<32x128xf32>
    %c0_3 = arith.constant 0 : index
    %c0_4 = arith.constant 0 : index
    %3 = vector.load %arg3[%c0_3, %c0_4] : memref<1x128xf32, #tpu.memory_space<vmem>>, vector<1x128xf32>
    %4 = vector.broadcast %3 : vector<1x128xf32> to vector<32x128xf32>
    %5 = arith.addf %2, %4 : vector<32x128xf32>
    %cst_5 = arith.constant 0.000000e+00 : f32
    %6 = vector.broadcast %cst_5 : f32 to vector<32x128xf32>
    %7 = arith.maximumf %5, %6 : vector<32x128xf32>
    %8 = arith.truncf %7 : vector<32x128xf32> to vector<32x128xbf16>
    %c0_6 = arith.constant 0 : index
    %c0_7 = arith.constant 0 : index
    %9 = vector.load %arg4[%c0_6, %c0_7] : memref<32x128xbf16, #tpu.memory_space<vmem>>, vector<32x128xbf16>
    tpu.vector_store %arg4[%c0_6, %c0_7], %8 {strides = array<i32>} : memref<32x128xbf16, #tpu.memory_space<vmem>>, vector<32x128xbf16>,
    return
  }
  func.func @transform_0(%arg0: i32) -> (i32, i32) {
    %c0_i32 = arith.constant 0 : i32
    %c0_i32_0 = arith.constant 0 : i32
    return %arg0, %c0_i32 : i32, i32
  }
  func.func @transform_1(%arg0: i32) -> (i32, i32) {
    %c0_i32 = arith.constant 0 : i32
    %c0_i32_0 = arith.constant 0 : i32
    %c0_i32_1 = arith.constant 0 : i32
    return %c0_i32, %c0_i32_0 : i32, i32
  }
  func.func @transform_2(%arg0: i32) -> (i32, i32) {
    %c0_i32 = arith.constant 0 : i32
    %c0_i32_0 = arith.constant 0 : i32
    %c0_i32_1 = arith.constant 0 : i32
    return %c0_i32, %c0_i32_0 : i32, i32
  }
  func.func @transform_3(%arg0: i32) -> (i32, i32) {
    %c0_i32 = arith.constant 0 : i32
    %c0_i32_0 = arith.constant 0 : i32
    return %arg0, %c0_i32 : i32, i32
  }
}

module attributes {stable_mosaic.version = 11 : i64} {
  func.func @_fused_matmul_bias_act_kernel(%arg0: i32, %arg1: memref<8x144xbf16, #tpu.memory_space<vmem>>, %arg2: memref<144x128xbf16, #tpu.memory_space<vmem>>, %arg3: memref<1x128xf32, #tpu.memory_space<vmem>>, %arg4: memref<8x128xbf16, #tpu.memory_space<vmem>>) attributes {dimension_semantics = [#tpu.dimension_semantics<parallel>], iteration_bounds = array<i64: 1>, scalar_prefetch = 0 : i64, scratch_operands = 0 : i64, tpu.core_type = #tpu.core_type<tc>, window_params = [{transform_indices = @transform_0, window_bounds = array<i64: 8, 144>}, {pipeline_mode = #tpu.pipeline_mode<synchronous>, transform_indices = @transform_1, window_bounds = array<i64: 144, 128>}, {pipeline_mode = #tpu.pipeline_mode<synchronous>, transform_indices = @transform_2, window_bounds = array<i64: 1, 128>}, {transform_indices = @transform_3, window_bounds = array<i64: 8, 128>}]} {
    %c0 = arith.constant 0 : index
    %c0_0 = arith.constant 0 : index
    %0 = vector.load %arg1[%c0, %c0_0] : memref<8x144xbf16, #tpu.memory_space<vmem>>, vector<8x144xbf16>
    %c0_1 = arith.constant 0 : index
    %c0_2 = arith.constant 0 : index
    %1 = vector.load %arg2[%c0_1, %c0_2] : memref<144x128xbf16, #tpu.memory_space<vmem>>, vector<144x128xbf16>
    %cst = arith.constant dense<0.000000e+00> : vector<8x128xf32>
    %2 = tpu.matmul %0, %1, %cst {dimension_numbers = #tpu.dot_dimension_numbers<[1], [0], [0], [1], [0, 0, 1, 1], [], []>} : vector<8x144xbf16>, vector<144x128xbf16>, vector<8x128xf32> -> vector<8x128xf32>
    %c0_3 = arith.constant 0 : index
    %c0_4 = arith.constant 0 : index
    %3 = vector.load %arg3[%c0_3, %c0_4] : memref<1x128xf32, #tpu.memory_space<vmem>>, vector<1x128xf32>
    %4 = vector.broadcast %3 : vector<1x128xf32> to vector<8x128xf32>
    %5 = arith.addf %2, %4 : vector<8x128xf32>
    %cst_5 = arith.constant 0.000000e+00 : f32
    %6 = vector.broadcast %cst_5 : f32 to vector<8x128xf32>
    %7 = arith.cmpf oge, %5, %6 : vector<8x128xf32>
    %cst_6 = arith.constant 0.00999999977 : f32
    %8 = vector.broadcast %cst_6 : f32 to vector<8x128xf32>
    %9 = arith.mulf %8, %5 : vector<8x128xf32>
    %10 = arith.select %7, %5, %9 : vector<8x128xi1>, vector<8x128xf32>
    %11 = arith.truncf %10 : vector<8x128xf32> to vector<8x128xbf16>
    %c0_7 = arith.constant 0 : index
    %c0_8 = arith.constant 0 : index
    %12 = vector.load %arg4[%c0_7, %c0_8] : memref<8x128xbf16, #tpu.memory_space<vmem>>, vector<8x128xbf16>
    tpu.vector_store %arg4[%c0_7, %c0_8], %11 {strides = array<i32>} : memref<8x128xbf16, #tpu.memory_space<vmem>>, vector<8x128xbf16>,
    return
  }
  func.func @transform_0(%arg0: i32) -> (i32, i32) {
    %c0_i32 = arith.constant 0 : i32
    %c0_i32_0 = arith.constant 0 : i32
    return %arg0, %c0_i32 : i32, i32
  }
  func.func @transform_1(%arg0: i32) -> (i32, i32) {
    %c0_i32 = arith.constant 0 : i32
    %c0_i32_0 = arith.constant 0 : i32
    %c0_i32_1 = arith.constant 0 : i32
    return %c0_i32, %c0_i32_0 : i32, i32
  }
  func.func @transform_2(%arg0: i32) -> (i32, i32) {
    %c0_i32 = arith.constant 0 : i32
    %c0_i32_0 = arith.constant 0 : i32
    %c0_i32_1 = arith.constant 0 : i32
    return %c0_i32, %c0_i32_0 : i32, i32
  }
  func.func @transform_3(%arg0: i32) -> (i32, i32) {
    %c0_i32 = arith.constant 0 : i32
    %c0_i32_0 = arith.constant 0 : i32
    return %arg0, %c0_i32 : i32, i32
  }
}

module attributes {stable_mosaic.version = 11 : i64} {
  func.func @_fused_matmul_bias_act_kernel(%arg0: i32, %arg1: memref<32x72xbf16, #tpu.memory_space<vmem>>, %arg2: memref<72x128xbf16, #tpu.memory_space<vmem>>, %arg3: memref<1x128xf32, #tpu.memory_space<vmem>>, %arg4: memref<32x128xbf16, #tpu.memory_space<vmem>>) attributes {dimension_semantics = [#tpu.dimension_semantics<parallel>], iteration_bounds = array<i64: 1>, scalar_prefetch = 0 : i64, scratch_operands = 0 : i64, tpu.core_type = #tpu.core_type<tc>, window_params = [{transform_indices = @transform_0, window_bounds = array<i64: 32, 72>}, {pipeline_mode = #tpu.pipeline_mode<synchronous>, transform_indices = @transform_1, window_bounds = array<i64: 72, 128>}, {pipeline_mode = #tpu.pipeline_mode<synchronous>, transform_indices = @transform_2, window_bounds = array<i64: 1, 128>}, {transform_indices = @transform_3, window_bounds = array<i64: 32, 128>}]} {
    %c0 = arith.constant 0 : index
    %c0_0 = arith.constant 0 : index
    %0 = vector.load %arg1[%c0, %c0_0] : memref<32x72xbf16, #tpu.memory_space<vmem>>, vector<32x72xbf16>
    %c0_1 = arith.constant 0 : index
    %c0_2 = arith.constant 0 : index
    %1 = vector.load %arg2[%c0_1, %c0_2] : memref<72x128xbf16, #tpu.memory_space<vmem>>, vector<72x128xbf16>
    %cst = arith.constant dense<0.000000e+00> : vector<32x128xf32>
    %2 = tpu.matmul %0, %1, %cst {dimension_numbers = #tpu.dot_dimension_numbers<[1], [0], [0], [1], [0, 0, 1, 1], [], []>} : vector<32x72xbf16>, vector<72x128xbf16>, vector<32x128xf32> -> vector<32x128xf32>
    %c0_3 = arith.constant 0 : index
    %c0_4 = arith.constant 0 : index
    %3 = vector.load %arg3[%c0_3, %c0_4] : memref<1x128xf32, #tpu.memory_space<vmem>>, vector<1x128xf32>
    %4 = vector.broadcast %3 : vector<1x128xf32> to vector<32x128xf32>
    %5 = arith.addf %2, %4 : vector<32x128xf32>
    %cst_5 = arith.constant 0.000000e+00 : f32
    %6 = vector.broadcast %cst_5 : f32 to vector<32x128xf32>
    %7 = arith.maximumf %5, %6 : vector<32x128xf32>
    %8 = arith.truncf %7 : vector<32x128xf32> to vector<32x128xbf16>
    %c0_6 = arith.constant 0 : index
    %c0_7 = arith.constant 0 : index
    %9 = vector.load %arg4[%c0_6, %c0_7] : memref<32x128xbf16, #tpu.memory_space<vmem>>, vector<32x128xbf16>
    tpu.vector_store %arg4[%c0_6, %c0_7], %8 {strides = array<i32>} : memref<32x128xbf16, #tpu.memory_space<vmem>>, vector<32x128xbf16>,
    return
  }
  func.func @transform_0(%arg0: i32) -> (i32, i32) {
    %c0_i32 = arith.constant 0 : i32
    %c0_i32_0 = arith.constant 0 : i32
    return %arg0, %c0_i32 : i32, i32
  }
  func.func @transform_1(%arg0: i32) -> (i32, i32) {
    %c0_i32 = arith.constant 0 : i32
    %c0_i32_0 = arith.constant 0 : i32
    %c0_i32_1 = arith.constant 0 : i32
    return %c0_i32, %c0_i32_0 : i32, i32
  }
  func.func @transform_2(%arg0: i32) -> (i32, i32) {
    %c0_i32 = arith.constant 0 : i32
    %c0_i32_0 = arith.constant 0 : i32
    %c0_i32_1 = arith.constant 0 : i32
    return %c0_i32, %c0_i32_0 : i32, i32
  }
  func.func @transform_3(%arg0: i32) -> (i32, i32) {
    %c0_i32 = arith.constant 0 : i32
    %c0_i32_0 = arith.constant 0 : i32
    return %arg0, %c0_i32 : i32, i32
  }
}

module attributes {stable_mosaic.version = 11 : i64} {
  func.func @_fused_matmul_bias_act_kernel(%arg0: i32, %arg1: memref<128x144xbf16, #tpu.memory_space<vmem>>, %arg2: memref<144x128xbf16, #tpu.memory_space<vmem>>, %arg3: memref<1x128xf32, #tpu.memory_space<vmem>>, %arg4: memref<128x128xbf16, #tpu.memory_space<vmem>>) attributes {dimension_semantics = [#tpu.dimension_semantics<parallel>], iteration_bounds = array<i64: 1>, scalar_prefetch = 0 : i64, scratch_operands = 0 : i64, tpu.core_type = #tpu.core_type<tc>, window_params = [{transform_indices = @transform_0, window_bounds = array<i64: 128, 144>}, {pipeline_mode = #tpu.pipeline_mode<synchronous>, transform_indices = @transform_1, window_bounds = array<i64: 144, 128>}, {pipeline_mode = #tpu.pipeline_mode<synchronous>, transform_indices = @transform_2, window_bounds = array<i64: 1, 128>}, {transform_indices = @transform_3, window_bounds = array<i64: 128, 128>}]} {
    %c0 = arith.constant 0 : index
    %c0_0 = arith.constant 0 : index
    %0 = vector.load %arg1[%c0, %c0_0] : memref<128x144xbf16, #tpu.memory_space<vmem>>, vector<128x144xbf16>
    %c0_1 = arith.constant 0 : index
    %c0_2 = arith.constant 0 : index
    %1 = vector.load %arg2[%c0_1, %c0_2] : memref<144x128xbf16, #tpu.memory_space<vmem>>, vector<144x128xbf16>
    %cst = arith.constant dense<0.000000e+00> : vector<128x128xf32>
    %2 = tpu.matmul %0, %1, %cst {dimension_numbers = #tpu.dot_dimension_numbers<[1], [0], [0], [1], [0, 0, 1, 1], [], []>} : vector<128x144xbf16>, vector<144x128xbf16>, vector<128x128xf32> -> vector<128x128xf32>
    %c0_3 = arith.constant 0 : index
    %c0_4 = arith.constant 0 : index
    %3 = vector.load %arg3[%c0_3, %c0_4] : memref<1x128xf32, #tpu.memory_space<vmem>>, vector<1x128xf32>
    %4 = vector.broadcast %3 : vector<1x128xf32> to vector<128x128xf32>
    %5 = arith.addf %2, %4 : vector<128x128xf32>
    %cst_5 = arith.constant 0.000000e+00 : f32
    %6 = vector.broadcast %cst_5 : f32 to vector<128x128xf32>
    %7 = arith.maximumf %5, %6 : vector<128x128xf32>
    %8 = arith.truncf %7 : vector<128x128xf32> to vector<128x128xbf16>
    %c0_6 = arith.constant 0 : index
    %c0_7 = arith.constant 0 : index
    %9 = vector.load %arg4[%c0_6, %c0_7] : memref<128x128xbf16, #tpu.memory_space<vmem>>, vector<128x128xbf16>
    tpu.vector_store %arg4[%c0_6, %c0_7], %8 {strides = array<i32>} : memref<128x128xbf16, #tpu.memory_space<vmem>>, vector<128x128xbf16>,
    return
  }
  func.func @transform_0(%arg0: i32) -> (i32, i32) {
    %c0_i32 = arith.constant 0 : i32
    %c0_i32_0 = arith.constant 0 : i32
    return %arg0, %c0_i32 : i32, i32
  }
  func.func @transform_1(%arg0: i32) -> (i32, i32) {
    %c0_i32 = arith.constant 0 : i32
    %c0_i32_0 = arith.constant 0 : i32
    %c0_i32_1 = arith.constant 0 : i32
    return %c0_i32, %c0_i32_0 : i32, i32
  }
  func.func @transform_2(%arg0: i32) -> (i32, i32) {
    %c0_i32 = arith.constant 0 : i32
    %c0_i32_0 = arith.constant 0 : i32
    %c0_i32_1 = arith.constant 0 : i32
    return %c0_i32, %c0_i32_0 : i32, i32
  }
  func.func @transform_3(%arg0: i32) -> (i32, i32) {
    %c0_i32 = arith.constant 0 : i32
    %c0_i32_0 = arith.constant 0 : i32
    return %arg0, %c0_i32 : i32, i32
  }
}

module attributes {stable_mosaic.version = 11 : i64} {
  func.func @_fused_matmul_bias_act_kernel(%arg0: i32, %arg1: memref<512x288xbf16, #tpu.memory_space<vmem>>, %arg2: memref<288x128xbf16, #tpu.memory_space<vmem>>, %arg3: memref<1x128xf32, #tpu.memory_space<vmem>>, %arg4: memref<512x128xf32, #tpu.memory_space<vmem>>) attributes {dimension_semantics = [#tpu.dimension_semantics<parallel>], iteration_bounds = array<i64: 1>, scalar_prefetch = 0 : i64, scratch_operands = 0 : i64, tpu.core_type = #tpu.core_type<tc>, window_params = [{transform_indices = @transform_0, window_bounds = array<i64: 512, 288>}, {pipeline_mode = #tpu.pipeline_mode<synchronous>, transform_indices = @transform_1, window_bounds = array<i64: 288, 128>}, {pipeline_mode = #tpu.pipeline_mode<synchronous>, transform_indices = @transform_2, window_bounds = array<i64: 1, 128>}, {transform_indices = @transform_3, window_bounds = array<i64: 512, 128>}]} {
    %c0 = arith.constant 0 : index
    %c0_0 = arith.constant 0 : index
    %0 = vector.load %arg1[%c0, %c0_0] : memref<512x288xbf16, #tpu.memory_space<vmem>>, vector<512x288xbf16>
    %c0_1 = arith.constant 0 : index
    %c0_2 = arith.constant 0 : index
    %1 = vector.load %arg2[%c0_1, %c0_2] : memref<288x128xbf16, #tpu.memory_space<vmem>>, vector<288x128xbf16>
    %cst = arith.constant dense<0.000000e+00> : vector<512x128xf32>
    %2 = tpu.matmul %0, %1, %cst {dimension_numbers = #tpu.dot_dimension_numbers<[1], [0], [0], [1], [0, 0, 1, 1], [], []>} : vector<512x288xbf16>, vector<288x128xbf16>, vector<512x128xf32> -> vector<512x128xf32>
    %c0_3 = arith.constant 0 : index
    %c0_4 = arith.constant 0 : index
    %3 = vector.load %arg3[%c0_3, %c0_4] : memref<1x128xf32, #tpu.memory_space<vmem>>, vector<1x128xf32>
    %4 = vector.broadcast %3 : vector<1x128xf32> to vector<512x128xf32>
    %5 = arith.addf %2, %4 : vector<512x128xf32>
    %cst_5 = arith.constant 0.000000e+00 : f32
    %6 = vector.broadcast %cst_5 : f32 to vector<512x128xf32>
    %7 = arith.subf %6, %5 : vector<512x128xf32>
    %8 = math.exp %7 : vector<512x128xf32>
    %cst_6 = arith.constant 1.000000e+00 : f32
    %9 = vector.broadcast %cst_6 : f32 to vector<512x128xf32>
    %10 = arith.addf %9, %8 : vector<512x128xf32>
    %11 = tpu.reciprocal %10 {approx = true} : vector<512x128xf32> -> vector<512x128xf32>
    %c0_7 = arith.constant 0 : index
    %c0_8 = arith.constant 0 : index
    %12 = vector.load %arg4[%c0_7, %c0_8] : memref<512x128xf32, #tpu.memory_space<vmem>>, vector<512x128xf32>
    tpu.vector_store %arg4[%c0_7, %c0_8], %11 {strides = array<i32>} : memref<512x128xf32, #tpu.memory_space<vmem>>, vector<512x128xf32>,
    return
  }
  func.func @transform_0(%arg0: i32) -> (i32, i32) {
    %c0_i32 = arith.constant 0 : i32
    %c0_i32_0 = arith.constant 0 : i32
    return %arg0, %c0_i32 : i32, i32
  }
  func.func @transform_1(%arg0: i32) -> (i32, i32) {
    %c0_i32 = arith.constant 0 : i32
    %c0_i32_0 = arith.constant 0 : i32
    %c0_i32_1 = arith.constant 0 : i32
    return %c0_i32, %c0_i32_0 : i32, i32
  }
  func.func @transform_2(%arg0: i32) -> (i32, i32) {
    %c0_i32 = arith.constant 0 : i32
    %c0_i32_0 = arith.constant 0 : i32
    %c0_i32_1 = arith.constant 0 : i32
    return %c0_i32, %c0_i32_0 : i32, i32
  }
  func.func @transform_3(%arg0: i32) -> (i32, i32) {
    %c0_i32 = arith.constant 0 : i32
    %c0_i32_0 = arith.constant 0 : i32
    return %arg0, %c0_i32 : i32, i32
  }
}

</mosaic_0001>

<bundles_post_ra>
// kernel: auto_encoder_forward.6
= control target key start
LH: loop header
LB: loop body
LE: loop exit
PB: predicated region body
PF: predicated region fallthrough
CT: control target
= control target key end

     0   :  { %vm94_vm0 = vcmask 261120   ;;  %s543_s1 = inlined_call_operand.vmem [shape: bf16[32,128], index: 1, kind: input, shape index: {}]   ;;  %s544_s0 = inlined_call_operand.vmem [shape: bf16[128,32], index: 0, kind: input, shape index: {}]   ;;  %s545_s2 = inlined_call_operand.vmem [shape: f32[1,128], index: 2, kind: input, shape index: {}]   ;;  %s546_s3 = inlined_call_operand.vmem [shape: bf16[128,128], index: 3, kind: output, shape index: {}]  }
   0x1   :  { %v448_v0 = vld [vmem:[%s543_s1] sm:$0xff]   ;;  %v449_v1 = vld [vmem:[%s543_s1 + $0x8] sm:$0xff]   ;;  %v454_v6 = vld [vmem:[%s544_s0 + $0x10] sm:$0xff]  }
   0x2   :  { %424 = vmatprep.subr.bf16.mxu0 %v448_v0  ;;  %444 = vmatprep.subr.bf16.mxu1 %v448_v0  ;;  %v450_v2 = vld [vmem:[%s544_s0] sm:$0xff]   ;;  %v452_v4 = vld [vmem:[%s544_s0 + $0x8] sm:$0xff]   ;;  %v455_v7 = vld [vmem:[%s544_s0 + $0x30] sm:$0xff]  }
   0x3   :  { %425 = vmatpush3.bf16.msra.mxu0 %v448_v0  ;;  %446 = vmatpush3.bf16.msra.mxu1 %v448_v0  ;;  %v451_v3 = vld [vmem:[%s544_s0 + $0x20] sm:$0xff]   ;;  %v453_v5 = vld [vmem:[%s544_s0 + $0x28] sm:$0xff]   ;;  %v456_v8 = vld [vmem:[%s544_s0 + $0x18] sm:$0xff]  }
   0x4   :  { %426 = vmatprep.subr.bf16.mxu0 %v449_v1  ;;  %445 = vmatprep.subr.bf16.mxu1 %v449_v1  ;;  %v457_v9 = vld [vmem:[%s544_s0 + $0x38] sm:$0xff]   ;;  %v316_v10 = vld [vmem:[%s545_s2] ss:$0 sm:$0xff] }
   0x5   :  { %428 = vmatprep.mubr.msk.bf16.mxu0 %vm94_vm0, %v450_v2  ;;  %436 = vmatprep.mubr.msk.bf16.mxu1 %vm94_vm0, %v451_v3 }
   0x7   :  { %427 = vmatpush3.bf16.msra.mxu0 %v449_v1  ;;  %447 = vmatpush3.bf16.msra.mxu1 %v449_v1 }
   0xa   :  { %429 = vmatmul.mubr.msk.bf16.vlgmr.msra.gmra.mrb[0].mxu0 %vm94_vm0, %v452_v4  ;;  %437 = vmatmul.mubr.msk.bf16.vlgmr.msra.gmra.mrb[0].mxu1 %vm94_vm0, %v453_v5 }
   0xb   :  { %432 = vmatprep.mubr.msk.bf16.mxu0 %vm94_vm0, %v454_v6  ;;  %440 = vmatprep.mubr.msk.bf16.mxu1 %vm94_vm0, %v455_v7 }
  0x12   :  { %433 = vmatmul.mubr.msk.bf16.gmra.mrb[4].mxu0 %vm94_vm0, %v456_v8  ;;  %441 = vmatmul.mubr.msk.bf16.gmra.mrb[4].mxu1 %vm94_vm0, %v457_v9 }
  0xdd   :  { %v430_v11 = vpop.f32.mrb[0].mxu0  ;;  %v438_v12 = vpop.f32.mrb[0].mxu1 }
  0xde   :  { %v162_v13 = vadd.f32 %v430_v11, %v316_v10  ;;  %v194_v14 = vadd.f32 %v438_v12, %v316_v10  ;;  %v153_v15 = vpop.f32.mrb[1].mxu0  ;;  %v185_v16 = vpop.f32.mrb[1].mxu1 }
  0xdf   :  { %v154_v17 = vadd.f32 %v316_v10, %v153_v15  ;;  %v186_v18 = vadd.f32 %v316_v10, %v185_v16  ;;  %v431_v19 = vpop.f32.mrb[2].mxu0  ;;  %v439_v20 = vpop.f32.mrb[2].mxu1 }
  0xe0   :  { %v165_v21 = vadd.f32 %v431_v19, %v316_v10  ;;  %v197_v22 = vadd.f32 %v439_v20, %v316_v10  ;;  %v156_v23 = vpop.f32.mrb[3].mxu0  ;;  %v188_v24 = vpop.f32.mrb[3].mxu1  ;;  %v218_v27 = vmax.f32 %v162_v13, 0.0  ;;  %v226_v28 = vmax.f32 %v194_v14, 0.0 }
  0xe1   :  { %v157_v25 = vadd.f32 %v316_v10, %v156_v23  ;;  %v189_v26 = vadd.f32 %v316_v10, %v188_v24  ;;  %v216_v31 = vmax.f32 %v154_v17, 0.0  ;;  %v224_v32 = vmax.f32 %v186_v18, 0.0 }
  0xe2   :  { %v219_v29 = vmax.f32 %v165_v21, 0.0  ;;  %v227_v30 = vmax.f32 %v197_v22, 0.0 }
  0xe3   :  { %v217_v33 = vmax.f32 %v157_v25, 0.0  ;;  %v225_v34 = vmax.f32 %v189_v26, 0.0 }
  0xe4   :  { %v375_v35 = vpack.c.bf16 %v219_v29, %v218_v27  ;;  %v395_v36 = vpack.c.bf16 %v227_v30, %v226_v28 }
  0xe5   :  { %v370_v37 = vpack.c.bf16 %v217_v33, %v216_v31  ;;  %v390_v38 = vpack.c.bf16 %v225_v34, %v224_v32  ;;  %v434_v39 = vpop.f32.mrb[4].mxu0  ;;  %v442_v40 = vpop.f32.mrb[4].mxu1 }
  0xe6   :  { %407 = vst [vmem:[%s546_s3 + $0x8] sm:$0xff] %v375_v35   ;;  %411 = vst [vmem:[%s546_s3 + $0x28] sm:$0xff] %v395_v36   ;;  %v178_v41 = vadd.f32 %v434_v39, %v316_v10  ;;  %v210_v42 = vadd.f32 %v442_v40, %v316_v10  ;;  %v169_v43 = vpop.f32.mrb[5].mxu0  ;;  %v201_v44 = vpop.f32.mrb[5].mxu1 }
  0xe7   :  { %371 = vst [vmem:[%s546_s3] sm:$0xff] %v370_v37   ;;  %410 = vst [vmem:[%s546_s3 + $0x20] sm:$0xff] %v390_v38   ;;  %v170_v45 = vadd.f32 %v316_v10, %v169_v43  ;;  %v202_v46 = vadd.f32 %v316_v10, %v201_v44  ;;  %v435_v47 = vpop.f32.mrb[6].mxu0  ;;  %v443_v48 = vpop.f32.mrb[6].mxu1 }
  0xe8   :  { %v181_v49 = vadd.f32 %v435_v47, %v316_v10  ;;  %v213_v50 = vadd.f32 %v443_v48, %v316_v10  ;;  %v172_v51 = vpop.f32.mrb[7].mxu0  ;;  %v204_v52 = vpop.f32.mrb[7].mxu1  ;;  %v222_v55 = vmax.f32 %v178_v41, 0.0  ;;  %v230_v56 = vmax.f32 %v210_v42, 0.0 }
  0xe9   :  { %v173_v53 = vadd.f32 %v316_v10, %v172_v51  ;;  %v205_v54 = vadd.f32 %v316_v10, %v204_v52  ;;  %v220_v59 = vmax.f32 %v170_v45, 0.0  ;;  %v228_v60 = vmax.f32 %v202_v46, 0.0 }
  0xea   :  { %v223_v57 = vmax.f32 %v181_v49, 0.0  ;;  %v231_v58 = vmax.f32 %v213_v50, 0.0 }
  0xeb   :  { %v221_v61 = vmax.f32 %v173_v53, 0.0  ;;  %v229_v62 = vmax.f32 %v205_v54, 0.0 }
  0xec   :  { %v385_v63 = vpack.c.bf16 %v223_v57, %v222_v55  ;;  %v405_v0 = vpack.c.bf16 %v231_v58, %v230_v56 }
  0xed   :  { %v380_v1 = vpack.c.bf16 %v221_v61, %v220_v59  ;;  %v400_v2 = vpack.c.bf16 %v229_v62, %v228_v60 }
  0xee   :  { %409 = vst [vmem:[%s546_s3 + $0x18] sm:$0xff] %v385_v63   ;;  %413 = vst [vmem:[%s546_s3 + $0x38] sm:$0xff] %v405_v0  }
  0xef   :  { %408 = vst [vmem:[%s546_s3 + $0x10] sm:$0xff] %v380_v1   ;;  %412 = vst [vmem:[%s546_s3 + $0x30] sm:$0xff] %v400_v2  }

// kernel: auto_encoder_forward.7
= control target key start
LH: loop header
LB: loop body
LE: loop exit
PB: predicated region body
PF: predicated region fallthrough
CT: control target
= control target key end

     0   :  { %vm204_vm0 = vcmask 261120   ;;  %s550_s1 = inlined_call_operand.vmem [shape: bf16[288,128], index: 1, kind: input, shape index: {}]   ;;  %s551_s0 = inlined_call_operand.vmem [shape: bf16[32,288], index: 0, kind: input, shape index: {}]   ;;  %s552_s2 = inlined_call_operand.vmem [shape: f32[1,128], index: 2, kind: input, shape index: {}]   ;;  %s553_s3 = inlined_call_operand.vmem [shape: bf16[32,128], index: 3, kind: output, shape index: {}]  }
   0x1   :  { %v423_v0 = vld [vmem:[%s550_s1 + $0x40] sm:$0xff]   ;;  %v425_v2 = vld [vmem:[%s550_s1 + $0x48] sm:$0xff]   ;;  %v427_v4 = vld [vmem:[%s550_s1 + $0x50] sm:$0xff]  }
   0x2   :  { %v424_v1 = vld [vmem:[%s550_s1] sm:$0xff]   ;;  %383 = vmatprep.subr.bf16.mxu0 %v423_v0  ;;  %v426_v3 = vld [vmem:[%s550_s1 + $0x8] sm:$0xff]   ;;  %v428_v5 = vld [vmem:[%s550_s1 + $0x10] sm:$0xff]  }
   0x3   :  { %384 = vmatpush3.bf16.msra.mxu0 %v424_v1  ;;  %v429_v6 = vld [vmem:[%s550_s1 + $0x58] sm:$0xff]   ;;  %v431_v8 = vld [vmem:[%s550_s1 + $0x60] sm:$0xff]   ;;  %v433_v11 = vld [vmem:[%s550_s1 + $0x68] sm:$0xff]  }
   0x4   :  { %385 = vmatprep.subr.bf16.mxu0 %v425_v2  ;;  %v430_v7 = vld [vmem:[%s550_s1 + $0x18] sm:$0xff]   ;;  %v432_v9 = vld [vmem:[%s550_s1 + $0x20] sm:$0xff]   ;;  %v434_v12 = vld [vmem:[%s550_s1 + $0x28] sm:$0xff]  }
   0x5   :  { %v438_v10 = vld [vmem:[%s550_s1 + $0x80] sm:$0xff]   ;;  %v435_v13 = vld [vmem:[%s550_s1 + $0x70] sm:$0xff]   ;;  %v443_v15 = vld [vmem:[%s550_s1 + $0x88] sm:$0xff]  }
   0x6   :  { %415 = vmatprep.subr.bf16.mxu1 %v438_v10  ;;  %v442_v14 = vld [vmem:[%s551_s0 + $0x4] ss:$12 sps:$4 sm:$0xff]   ;;  %v444_v16 = vld [vmem:[%s551_s0 + $0x8] ss:$12 sps:$4 sm:$0xff]   ;;  %v445_v17 = vld [vmem:[%s551_s0 + $0x20] ss:$12 sps:$4 sm:$0xff]  }
   0x7   :  { %386 = vmatpush3.bf16.msra.mxu0 %v426_v3  ;;  %416 = vmatpush3.bf16.msra.mxu1 %v438_v10  ;;  %v436_v18 = vld [vmem:[%s550_s1 + $0x30] sm:$0xff]   ;;  %v437_v19 = vld [vmem:[%s550_s1 + $0x78] sm:$0xff]   ;;  %v440_v21 = vld [vmem:[%s551_s0] ss:$12 sps:$4 sm:$0xff]  }
   0x8   :  { %387 = vmatprep.subr.bf16.mxu0 %v427_v4  ;;  %243 = vmatprep.mubr.bf16.mxu0 %v442_v14  ;;  %v439_v20 = vld [vmem:[%s550_s1 + $0x38] sm:$0xff]   ;;  %v337_v30 = vld [vmem:[%s552_s2] ss:$0 sm:$0xff] }
   0x9   :  { %417 = vmatprep.subr.bf16.mxu1 %v443_v15  ;;  %419 = vmatprep.mubr.msk.bf16.mxu1 %vm204_vm0, %v444_v16  ;;  %v446_v22 = vld [vmem:[%s551_s0 + $0x1c] ss:$12 sps:$4 sm:$0xff]   ;;  %v448_v23 = vld [vmem:[%s551_s0 + $0x18] ss:$12 sps:$4 sm:$0xff]  }
   0xb   :  { %388 = vmatpush3.bf16.msra.mxu0 %v428_v5  ;;  %418 = vmatpush3.bf16.msra.mxu1 %v443_v15 }
   0xc   :  { %389 = vmatprep.subr.bf16.mxu0 %v429_v6 }
   0xe   :  { %420 = vmatmul.mubr.msk.bf16.vlgmr.msra.gmra.mrb[0].mxu1 %vm204_vm0, %v445_v17 }
   0xf   :  { %390 = vmatpush3.bf16.msra.mxu0 %v430_v7 }
  0x10   :  { %391 = vmatprep.subr.bf16.mxu0 %v431_v8 }
  0x13   :  { %392 = vmatpush3.bf16.msra.mxu0 %v432_v9 }
  0x14   :  { %393 = vmatprep.subr.bf16.mxu0 %v433_v11 }
  0x17   :  { %394 = vmatpush3.bf16.msra.mxu0 %v434_v12 }
  0x18   :  { %395 = vmatprep.subr.bf16.mxu0 %v435_v13 }
  0x1b   :  { %396 = vmatpush3.bf16.msra.mxu0 %v436_v18 }
  0x1c   :  { %397 = vmatprep.subr.bf16.mxu0 %v437_v19 }
  0x1f   :  { %398 = vmatpush3.bf16.msra.mxu0 %v439_v20 }
  0x22   :  { %244 = vmatmul.mubr.bf16.vlgmr.msra.gmra.mrb[0].mxu0 %v440_v21 }
  0x23   :  { %251 = vmatprep.mubr.bf16.mxu0 %v446_v22 }
  0x2a   :  { %252 = vmatmul.mubr.bf16.gmra.mrb[4].mxu0 %v448_v23 }
  0xe1   :  { %v421_v24 = vpop.f32.mrb[0].mxu1 }
  0xe2   :  { %v294_v25 = vpop.f32.mrb[1].mxu1 }
  0xe3   :  { %v422_v26 = vpop.f32.mrb[2].mxu1 }
  0xe4   :  { %v297_v27 = vpop.f32.mrb[3].mxu1 }
  0xf5   :  { %v399_v28 = vpop.f32.mrb[0].mxu0 }
  0xf6   :  { %v400_v29 = vpop.f32.mrb[1].mxu0 }
  0xf7   :  { %v401_v31 = vadd.f32 %v400_v29, %v399_v28  ;;  %v402_v32 = vpop.f32.mrb[2].mxu0 }
  0xf8   :  { %v403_v33 = vpop.f32.mrb[3].mxu0 }
  0xf9   :  { %v404_v34 = vadd.f32 %v403_v33, %v402_v32  ;;  %v246_v35 = vadd.f32 %v401_v31, %v337_v30 }
  0xfb   :  { %v295_v36 = vadd.f32 %v294_v25, %v246_v35  ;;  %v249_v37 = vadd.f32 %v404_v34, %v337_v30 }
  0xfd   :  { %v298_v38 = vadd.f32 %v297_v27, %v249_v37  ;;  %v405_v39 = vpop.f32.mrb[4].mxu0  ;;  %v309_v41 = vmax.f32 %v295_v36, 0.0 }
  0xfe   :  { %v406_v40 = vpop.f32.mrb[5].mxu0 }
  0xff   :  { %v310_v42 = vmax.f32 %v298_v38, 0.0  ;;  %v407_v43 = vadd.f32 %v406_v40, %v405_v39  ;;  %v408_v44 = vpop.f32.mrb[6].mxu0 }
 0x100   :  { %v409_v45 = vpop.f32.mrb[7].mxu0 }
 0x101   :  { %v375_v46 = vpack.c.bf16 %v310_v42, %v309_v41  ;;  %v254_v47 = vadd.f32 %v407_v43, %v337_v30  ;;  %v410_v48 = vadd.f32 %v409_v45, %v408_v44 }
 0x103   :  { %376 = vst [vmem:[%s553_s3] sm:$0xff] %v375_v46   ;;  %v303_v49 = vadd.f32 %v421_v24, %v254_v47  ;;  %v257_v50 = vadd.f32 %v410_v48, %v337_v30 }
 0x105   :  { %v306_v51 = vadd.f32 %v422_v26, %v257_v50  ;;  %v311_v52 = vmax.f32 %v303_v49, 0.0 }
 0x107   :  { %v312_v53 = vmax.f32 %v306_v51, 0.0 }
 0x109   :  { %v380_v54 = vpack.c.bf16 %v312_v53, %v311_v52 }
 0x10b   :  { %382 = vst [vmem:[%s553_s3 + $0x8] sm:$0xff] %v380_v54  }

// kernel: auto_encoder_forward.8
= control target key start
LH: loop header
LB: loop body
LE: loop exit
PB: predicated region body
PF: predicated region fallthrough
CT: control target
= control target key end

     0   :  { %v179_v0 = vmov 0   ;;  %vm101_vm0 = vcmask 130048   ;;  %s236_s1 = inlined_call_operand.vmem [shape: bf16[144,128], index: 1, kind: input, shape index: {}]   ;;  %s237_s0 = inlined_call_operand.vmem [shape: bf16[8,144], index: 0, kind: input, shape index: {}]   ;;  %s238_s2 = inlined_call_operand.vmem [shape: f32[1,128], index: 2, kind: input, shape index: {}]   ;;  %s239_s3 = inlined_call_operand.vmem [shape: bf16[8,128], index: 3, kind: output, shape index: {}]  }
   0x1   :  { %105 = vmatprep.subr.bf16.mxu0 %v179_v0  ;;  %v168_v1 = vld [vmem:[%s236_s1] sm:$0xff]   ;;  %v169_v2 = vld [vmem:[%s236_s1 + $0x8] sm:$0xff]   ;;  %v170_v3 = vld [vmem:[%s236_s1 + $0x10] sm:$0xff]  }
   0x2   :  { %106 = vmatpush1.bf16.msra.mxu0 %v168_v1  ;;  %v15_v4 = vld [vmem:[%s237_s0] sm:$0xff]  ;;  %v171_v5 = vld [vmem:[%s236_s1 + $0x18] sm:$0xff]   ;;  %v173_v8 = vld [vmem:[%s236_s1 + $0x28] sm:$0xff]  }
   0x3   :  { %107 = vmatprep.subr.bf16.mxu0 %v179_v0  ;;  %v156_v6 = vcombine.high %v15_v4, %v15_v4  ;;  %v172_v7 = vld [vmem:[%s236_s1 + $0x20] sm:$0xff]   ;;  %v174_v9 = vld [vmem:[%s236_s1 + $0x30] sm:$0xff]   ;;  %v175_v10 = vld [vmem:[%s236_s1 + $0x38] sm:$0xff]   ;;  %v155_v12 = vcombine.low %v15_v4, %v15_v4 }
   0x4   :  { %v176_v11 = vld [vmem:[%s236_s1 + $0x40] sm:$0xff]  }
   0x5   :  { %166 = vmatprep.mubr.msk.bf16.mxu0 %vm101_vm0, %v156_v6  ;;  %v154_v13 = vld [vmem:[%s238_s2] ss:$0 sm:$0xff] }
   0x6   :  { %108 = vmatpush1.bf16.msra.mxu0 %v169_v2 }
   0x7   :  { %109 = vmatprep.subr.bf16.mxu0 %v179_v0 }
   0xa   :  { %110 = vmatpush1.bf16.msra.mxu0 %v170_v3 }
   0xb   :  { %111 = vmatprep.subr.bf16.mxu0 %v179_v0 }
   0xe   :  { %112 = vmatpush1.bf16.msra.mxu0 %v171_v5 }
   0xf   :  { %113 = vmatprep.subr.bf16.mxu0 %v179_v0 }
  0x12   :  { %114 = vmatpush1.bf16.msra.mxu0 %v172_v7 }
  0x13   :  { %115 = vmatprep.subr.bf16.mxu0 %v179_v0 }
  0x16   :  { %116 = vmatpush1.bf16.msra.mxu0 %v173_v8 }
  0x17   :  { %117 = vmatprep.subr.bf16.mxu0 %v179_v0 }
  0x1a   :  { %118 = vmatpush1.bf16.msra.mxu0 %v174_v9 }
  0x1b   :  { %119 = vmatprep.subr.bf16.mxu0 %v179_v0 }
  0x1e   :  { %120 = vmatpush1.bf16.msra.mxu0 %v175_v10 }
  0x1f   :  { %121 = vmatprep.subr.bf16.mxu0 %v179_v0 }
  0x22   :  { %122 = vmatpush1.bf16.msra.mxu0 %v176_v11 }
  0x25   :  { %138 = vmatmul.mubr.bf16.vlgmr.msra.gmra.mrb[0].mxu0 %v155_v12 }
  0xf8   :  { %v139_v14 = vpop.f32.mrb[0].mxu0 }
  0xf9   :  { %v140_v15 = vadd.f32 %v154_v13, %v139_v14  ;;  %v141_v16 = vpop.f32.mrb[1].mxu0 }
  0xfa   :  { %v142_v17 = vpop.f32.mrb[2].mxu0 }
  0xfb   :  { %vm145_vm1 = vcmp.ge.f32.partialorder %v140_v15, 0.0  ;;  %v146_v18 = vmul.f32 0.01, %v140_v15  ;;  %v143_v19 = vpop.f32.mrb[3].mxu0 }
  0xfd   :  { %v147_v20 = vsel %vm145_vm1, %v140_v15, %v146_v18 }
  0xfe   :  { %v148_v21 = vpack.c.bf16 %v147_v20, %v147_v20 }
 0x100   :  { %149 = vst [vmem:[%s239_s3] sm:$0xf] %v148_v21 }

// kernel: auto_encoder_forward.9
= control target key start
LH: loop header
LB: loop body
LE: loop exit
PB: predicated region body
PF: predicated region fallthrough
CT: control target
= control target key end

     0   :  { %vm72_vm0 = vcmask 588800   ;;  %vm79_vm1 = vcmask 1043456   ;;  %s268_s1 = inlined_call_operand.vmem [shape: bf16[72,128], index: 1, kind: input, shape index: {}]   ;;  %s269_s0 = inlined_call_operand.vmem [shape: bf16[32,72], index: 0, kind: input, shape index: {}]   ;;  %s270_s2 = inlined_call_operand.vmem [shape: f32[1,128], index: 2, kind: input, shape index: {}]   ;;  %s271_s3 = inlined_call_operand.vmem [shape: bf16[32,128], index: 3, kind: output, shape index: {}]  }
   0x1   :  { %v211_v0 = vld [vmem:[%s268_s1] sm:$0xff]   ;;  %v212_v1 = vld [vmem:[%s268_s1 + $0x8] sm:$0xff]   ;;  %v213_v2 = vld [vmem:[%s268_s1 + $0x10] sm:$0xff]  }
   0x2   :  { %196 = vmatprep.subr.bf16.mxu0 %v211_v0  ;;  %v216_v3 = vld [vmem:[%s269_s0] sm:$0xff]   ;;  %v214_v4 = vld [vmem:[%s268_s1 + $0x18] sm:$0xff]   ;;  %v217_v7 = vld [vmem:[%s269_s0 + $0x8] sm:$0xff]  }
   0x3   :  { %197 = vmatpush3.bf16.msra.mxu0 %v211_v0  ;;  %206 = vmatprep.mubr.msk.bf16.mxu0 %vm72_vm0, %v216_v3  ;;  %v215_v5 = vld [vmem:[%s268_s1 + $0x20] ss:$0 sps:$4 sm:$0xff]  }
   0x4   :  { %198 = vmatprep.subr.bf16.mxu0 %v212_v1  ;;  %v81_v6 = vsel %vm79_vm1, %v215_v5, 0  ;;  %v160_v8 = vld [vmem:[%s270_s2] ss:$0 sm:$0xff] }
   0x7   :  { %199 = vmatpush3.bf16.msra.mxu0 %v212_v1 }
   0x8   :  { %200 = vmatprep.subr.bf16.mxu0 %v213_v2 }
   0xb   :  { %201 = vmatpush3.bf16.msra.mxu0 %v213_v2 }
   0xc   :  { %202 = vmatprep.subr.bf16.mxu0 %v214_v4 }
   0xf   :  { %203 = vmatpush3.bf16.msra.mxu0 %v214_v4 }
  0x10   :  { %210 = vmatprep.subr.msk.bf16.mxu0 %vm79_vm1, %v215_v5 }
  0x13   :  { %205 = vmatpush3.bf16.msra.mxu0 %v81_v6 }
  0x16   :  { %207 = vmatmul.mubr.msk.bf16.vlgmr.msra.gmra.mrb[0].mxu0 %vm72_vm0, %v217_v7 }
  0xe9   :  { %v208_v9 = vpop.f32.mrb[0].mxu0 }
  0xea   :  { %v126_v10 = vadd.f32 %v208_v9, %v160_v8  ;;  %v117_v11 = vpop.f32.mrb[1].mxu0 }
  0xeb   :  { %v118_v12 = vadd.f32 %v160_v8, %v117_v11  ;;  %v209_v13 = vpop.f32.mrb[2].mxu0 }
  0xec   :  { %v129_v14 = vadd.f32 %v209_v13, %v160_v8  ;;  %v120_v15 = vpop.f32.mrb[3].mxu0  ;;  %v134_v17 = vmax.f32 %v126_v10, 0.0 }
  0xed   :  { %v121_v16 = vadd.f32 %v160_v8, %v120_v15  ;;  %v132_v19 = vmax.f32 %v118_v12, 0.0 }
  0xee   :  { %v135_v18 = vmax.f32 %v129_v14, 0.0 }
  0xef   :  { %v133_v20 = vmax.f32 %v121_v16, 0.0 }
  0xf0   :  { %v186_v21 = vpack.c.bf16 %v135_v18, %v134_v17 }
  0xf1   :  { %v181_v22 = vpack.c.bf16 %v133_v20, %v132_v19 }
  0xf2   :  { %188 = vst [vmem:[%s271_s3 + $0x8] sm:$0xff] %v186_v21  }
  0xf3   :  { %182 = vst [vmem:[%s271_s3] sm:$0xff] %v181_v22  }

// kernel: auto_encoder_forward.10
= control target key start
LH: loop header
LB: loop body
LE: loop exit
PB: predicated region body
PF: predicated region fallthrough
CT: control target
= control target key end

     0   :  { %v569_v0 = vmov 0   ;;  %vm182_vm0 = vcmask 130048   ;;  %s718_s1 = inlined_call_operand.vmem [shape: bf16[144,128], index: 1, kind: input, shape index: {}]   ;;  %s719_s0 = inlined_call_operand.vmem [shape: bf16[128,144], index: 0, kind: input, shape index: {}]   ;;  %s720_s2 = inlined_call_operand.vmem [shape: f32[1,128], index: 2, kind: input, shape index: {}]   ;;  %s721_s3 = inlined_call_operand.vmem [shape: bf16[128,128], index: 3, kind: output, shape index: {}]  }
   0x1   :  { %207 = vmatprep.subr.bf16.mxu0 %v569_v0  ;;  %517 = vmatprep.subr.bf16.mxu1 %v569_v0  ;;  %v536_v1 = vld [vmem:[%s718_s1] sm:$0xff]   ;;  %v537_v2 = vld [vmem:[%s718_s1 + $0x8] sm:$0xff]   ;;  %v538_v3 = vld [vmem:[%s718_s1 + $0x10] sm:$0xff]  }
   0x2   :  { %208 = vmatpush1.bf16.msra.mxu0 %v536_v1  ;;  %526 = vmatpush1.bf16.msra.mxu1 %v536_v1  ;;  %v539_v4 = vld [vmem:[%s718_s1 + $0x18] sm:$0xff]   ;;  %v547_v5 = vld [vmem:[%s719_s0 + $0x4] ss:$8 sps:$4 sm:$0xff]   ;;  %v542_v9 = vld [vmem:[%s718_s1 + $0x30] sm:$0xff]  }
   0x3   :  { %209 = vmatprep.subr.bf16.mxu0 %v569_v0  ;;  %518 = vmatprep.subr.bf16.mxu1 %v569_v0  ;;  %v550_v6 = vld [vmem:[%s719_s0 + $0x44] ss:$8 sps:$4 sm:$0xff]   ;;  %v543_v10 = vld [vmem:[%s718_s1 + $0x38] sm:$0xff]   ;;  %v545_v12 = vld [vmem:[%s719_s0] ss:$8 sps:$4 sm:$0xff]  }
   0x4   :  { %430 = vmatprep.mubr.msk.bf16.mxu0 %vm182_vm0, %v547_v5  ;;  %434 = vmatprep.mubr.msk.bf16.mxu1 %vm182_vm0, %v550_v6  ;;  %v540_v7 = vld [vmem:[%s718_s1 + $0x20] sm:$0xff]   ;;  %v541_v8 = vld [vmem:[%s718_s1 + $0x28] sm:$0xff]   ;;  %v551_v14 = vld [vmem:[%s719_s0 + $0x14] ss:$8 sps:$4 sm:$0xff]  }
   0x5   :  { %v544_v11 = vld [vmem:[%s718_s1 + $0x40] sm:$0xff]   ;;  %v553_v15 = vld [vmem:[%s719_s0 + $0x54] ss:$8 sps:$4 sm:$0xff]   ;;  %v555_v16 = vld [vmem:[%s719_s0 + $0x10] ss:$8 sps:$4 sm:$0xff]  }
   0x6   :  { %210 = vmatpush1.bf16.msra.mxu0 %v537_v2  ;;  %527 = vmatpush1.bf16.msra.mxu1 %v537_v2  ;;  %v548_v13 = vld [vmem:[%s719_s0 + $0x40] ss:$8 sps:$4 sm:$0xff]   ;;  %v556_v17 = vld [vmem:[%s719_s0 + $0x50] ss:$8 sps:$4 sm:$0xff]   ;;  %v557_v18 = vld [vmem:[%s719_s0 + $0x24] ss:$8 sps:$4 sm:$0xff]  }
   0x7   :  { %211 = vmatprep.subr.bf16.mxu0 %v569_v0  ;;  %519 = vmatprep.subr.bf16.mxu1 %v569_v0  ;;  %v559_v19 = vld [vmem:[%s719_s0 + $0x64] ss:$8 sps:$4 sm:$0xff]   ;;  %v561_v20 = vld [vmem:[%s719_s0 + $0x20] ss:$8 sps:$4 sm:$0xff]   ;;  %v563_v22 = vld [vmem:[%s719_s0 + $0x34] ss:$8 sps:$4 sm:$0xff]  }
   0x8   :  { %v562_v21 = vld [vmem:[%s719_s0 + $0x60] ss:$8 sps:$4 sm:$0xff]   ;;  %v565_v23 = vld [vmem:[%s719_s0 + $0x74] ss:$8 sps:$4 sm:$0xff]   ;;  %v567_v24 = vld [vmem:[%s719_s0 + $0x30] ss:$8 sps:$4 sm:$0xff]  }
   0x9   :  { %v568_v25 = vld [vmem:[%s719_s0 + $0x70] ss:$8 sps:$4 sm:$0xff]   ;;  %v676_v26 = vld [vmem:[%s720_s2] ss:$0 sm:$0xff] }
   0xa   :  { %212 = vmatpush1.bf16.msra.mxu0 %v538_v3  ;;  %528 = vmatpush1.bf16.msra.mxu1 %v538_v3 }
   0xb   :  { %213 = vmatprep.subr.bf16.mxu0 %v569_v0  ;;  %520 = vmatprep.subr.bf16.mxu1 %v569_v0 }
   0xe   :  { %214 = vmatpush1.bf16.msra.mxu0 %v539_v4  ;;  %529 = vmatpush1.bf16.msra.mxu1 %v539_v4 }
   0xf   :  { %215 = vmatprep.subr.bf16.mxu0 %v569_v0  ;;  %521 = vmatprep.subr.bf16.mxu1 %v569_v0 }
  0x12   :  { %216 = vmatpush1.bf16.msra.mxu0 %v540_v7  ;;  %530 = vmatpush1.bf16.msra.mxu1 %v540_v7 }
  0x13   :  { %217 = vmatprep.subr.bf16.mxu0 %v569_v0  ;;  %522 = vmatprep.subr.bf16.mxu1 %v569_v0 }
  0x16   :  { %218 = vmatpush1.bf16.msra.mxu0 %v541_v8  ;;  %531 = vmatpush1.bf16.msra.mxu1 %v541_v8 }
  0x17   :  { %219 = vmatprep.subr.bf16.mxu0 %v569_v0  ;;  %523 = vmatprep.subr.bf16.mxu1 %v569_v0 }
  0x1a   :  { %220 = vmatpush1.bf16.msra.mxu0 %v542_v9  ;;  %532 = vmatpush1.bf16.msra.mxu1 %v542_v9 }
  0x1b   :  { %221 = vmatprep.subr.bf16.mxu0 %v569_v0  ;;  %524 = vmatprep.subr.bf16.mxu1 %v569_v0 }
  0x1e   :  { %222 = vmatpush1.bf16.msra.mxu0 %v543_v10  ;;  %533 = vmatpush1.bf16.msra.mxu1 %v543_v10 }
  0x1f   :  { %223 = vmatprep.subr.bf16.mxu0 %v569_v0  ;;  %525 = vmatprep.subr.bf16.mxu1 %v569_v0 }
  0x22   :  { %224 = vmatpush1.bf16.msra.mxu0 %v544_v11  ;;  %534 = vmatpush1.bf16.msra.mxu1 %v544_v11 }
  0x25   :  { %240 = vmatmul.mubr.bf16.vlgmr.msra.gmra.mrb[0].mxu0 %v545_v12  ;;  %272 = vmatmul.mubr.bf16.vlgmr.msra.gmra.mrb[0].mxu1 %v548_v13 }
  0x26   :  { %431 = vmatprep.mubr.msk.bf16.mxu0 %vm182_vm0, %v551_v14  ;;  %435 = vmatprep.mubr.msk.bf16.mxu1 %vm182_vm0, %v553_v15 }
  0x2d   :  { %248 = vmatmul.mubr.bf16.gmra.mrb[4].mxu0 %v555_v16  ;;  %280 = vmatmul.mubr.bf16.gmra.mrb[4].mxu1 %v556_v17 }
  0x2e   :  { %432 = vmatprep.mubr.msk.bf16.mxu0 %vm182_vm0, %v557_v18  ;;  %436 = vmatprep.mubr.msk.bf16.mxu1 %vm182_vm0, %v559_v19 }
  0x35   :  { %256 = vmatmul.mubr.bf16.gmra.mrb[8].mxu0 %v561_v20  ;;  %288 = vmatmul.mubr.bf16.gmra.mrb[8].mxu1 %v562_v21 }
  0x36   :  { %433 = vmatprep.mubr.msk.bf16.mxu0 %vm182_vm0, %v563_v22  ;;  %437 = vmatprep.mubr.msk.bf16.mxu1 %vm182_vm0, %v565_v23 }
  0x3d   :  { %264 = vmatmul.mubr.bf16.gmra.mrb[12].mxu0 %v567_v24  ;;  %296 = vmatmul.mubr.bf16.gmra.mrb[12].mxu1 %v568_v25 }
  0xf8   :  { %v241_v27 = vpop.f32.mrb[0].mxu0  ;;  %v273_v28 = vpop.f32.mrb[0].mxu1 }
  0xf9   :  { %v242_v29 = vadd.f32 %v676_v26, %v241_v27  ;;  %v274_v30 = vadd.f32 %v676_v26, %v273_v28  ;;  %v243_v31 = vpop.f32.mrb[1].mxu0  ;;  %v275_v32 = vpop.f32.mrb[1].mxu1 }
  0xfa   :  { %v244_v33 = vpop.f32.mrb[2].mxu0  ;;  %v276_v34 = vpop.f32.mrb[2].mxu1 }
  0xfb   :  { %v245_v35 = vadd.f32 %v676_v26, %v244_v33  ;;  %v277_v36 = vadd.f32 %v676_v26, %v276_v34  ;;  %v246_v37 = vpop.f32.mrb[3].mxu0  ;;  %v278_v38 = vpop.f32.mrb[3].mxu1  ;;  %v304_v39 = vmax.f32 %v242_v29, 0.0  ;;  %v312_v40 = vmax.f32 %v274_v30, 0.0 }
  0xfd   :  { %v305_v41 = vmax.f32 %v245_v35, 0.0  ;;  %v313_v42 = vmax.f32 %v277_v36, 0.0 }
  0xff   :  { %v473_v43 = vpack.c.bf16 %v305_v41, %v304_v39  ;;  %v493_v44 = vpack.c.bf16 %v313_v42, %v312_v40 }
 0x100   :  { %v249_v45 = vpop.f32.mrb[4].mxu0  ;;  %v281_v46 = vpop.f32.mrb[4].mxu1 }
 0x101   :  { %474 = vst [vmem:[%s721_s3] sm:$0xff] %v473_v43   ;;  %513 = vst [vmem:[%s721_s3 + $0x20] sm:$0xff] %v493_v44   ;;  %v250_v47 = vadd.f32 %v676_v26, %v249_v45  ;;  %v282_v48 = vadd.f32 %v676_v26, %v281_v46  ;;  %v251_v49 = vpop.f32.mrb[5].mxu0  ;;  %v283_v50 = vpop.f32.mrb[5].mxu1 }
 0x102   :  { %v252_v51 = vpop.f32.mrb[6].mxu0  ;;  %v284_v52 = vpop.f32.mrb[6].mxu1 }
 0x103   :  { %v253_v53 = vadd.f32 %v676_v26, %v252_v51  ;;  %v285_v54 = vadd.f32 %v676_v26, %v284_v52  ;;  %v254_v55 = vpop.f32.mrb[7].mxu0  ;;  %v286_v56 = vpop.f32.mrb[7].mxu1  ;;  %v306_v57 = vmax.f32 %v250_v47, 0.0  ;;  %v314_v58 = vmax.f32 %v282_v48, 0.0 }
 0x105   :  { %v307_v59 = vmax.f32 %v253_v53, 0.0  ;;  %v315_v60 = vmax.f32 %v285_v54, 0.0 }
 0x107   :  { %v478_v61 = vpack.c.bf16 %v307_v59, %v306_v57  ;;  %v498_v62 = vpack.c.bf16 %v315_v60, %v314_v58 }
 0x108   :  { %v257_v63 = vpop.f32.mrb[8].mxu0  ;;  %v289_v0 = vpop.f32.mrb[8].mxu1 }
 0x109   :  { %510 = vst [vmem:[%s721_s3 + $0x8] sm:$0xff] %v478_v61   ;;  %514 = vst [vmem:[%s721_s3 + $0x28] sm:$0xff] %v498_v62   ;;  %v258_v1 = vadd.f32 %v676_v26, %v257_v63  ;;  %v290_v2 = vadd.f32 %v676_v26, %v289_v0  ;;  %v259_v3 = vpop.f32.mrb[9].mxu0  ;;  %v291_v4 = vpop.f32.mrb[9].mxu1 }
 0x10a   :  { %v260_v5 = vpop.f32.mrb[10].mxu0  ;;  %v292_v6 = vpop.f32.mrb[10].mxu1 }
 0x10b   :  { %v261_v7 = vadd.f32 %v676_v26, %v260_v5  ;;  %v293_v8 = vadd.f32 %v676_v26, %v292_v6  ;;  %v262_v9 = vpop.f32.mrb[11].mxu0  ;;  %v294_v10 = vpop.f32.mrb[11].mxu1  ;;  %v308_v11 = vmax.f32 %v258_v1, 0.0  ;;  %v316_v12 = vmax.f32 %v290_v2, 0.0 }
 0x10d   :  { %v309_v13 = vmax.f32 %v261_v7, 0.0  ;;  %v317_v14 = vmax.f32 %v293_v8, 0.0 }
 0x10f   :  { %v483_v15 = vpack.c.bf16 %v309_v13, %v308_v11  ;;  %v503_v16 = vpack.c.bf16 %v317_v14, %v316_v12 }
 0x110   :  { %v265_v17 = vpop.f32.mrb[12].mxu0  ;;  %v297_v18 = vpop.f32.mrb[12].mxu1 }
 0x111   :  { %511 = vst [vmem:[%s721_s3 + $0x10] sm:$0xff] %v483_v15   ;;  %515 = vst [vmem:[%s721_s3 + $0x30] sm:$0xff] %v503_v16   ;;  %v266_v19 = vadd.f32 %v676_v26, %v265_v17  ;;  %v298_v20 = vadd.f32 %v676_v26, %v297_v18  ;;  %v267_v21 = vpop.f32.mrb[13].mxu0  ;;  %v299_v22 = vpop.f32.mrb[13].mxu1 }
 0x112   :  { %v268_v23 = vpop.f32.mrb[14].mxu0  ;;  %v300_v24 = vpop.f32.mrb[14].mxu1 }
 0x113   :  { %v269_v25 = vadd.f32 %v676_v26, %v268_v23  ;;  %v301_v27 = vadd.f32 %v676_v26, %v300_v24  ;;  %v270_v28 = vpop.f32.mrb[15].mxu0  ;;  %v302_v29 = vpop.f32.mrb[15].mxu1  ;;  %v310_v30 = vmax.f32 %v266_v19, 0.0  ;;  %v318_v31 = vmax.f32 %v298_v20, 0.0 }
 0x115   :  { %v311_v32 = vmax.f32 %v269_v25, 0.0  ;;  %v319_v33 = vmax.f32 %v301_v27, 0.0 }
 0x117   :  { %v488_v34 = vpack.c.bf16 %v311_v32, %v310_v30  ;;  %v508_v35 = vpack.c.bf16 %v319_v33, %v318_v31 }
 0x119   :  { %512 = vst [vmem:[%s721_s3 + $0x18] sm:$0xff] %v488_v34   ;;  %516 = vst [vmem:[%s721_s3 + $0x38] sm:$0xff] %v508_v35  }

// kernel: auto_encoder_forward.11
= control target key start
LH: loop header
LB: loop body
LE: loop exit
PB: predicated region body
PF: predicated region fallthrough
CT: control target
= control target key end

     0   :  { %v2522_v0 = vmov 0   ;;  %vm774_vm0 = vcmask 261120   ;;  %s3383_s1 = inlined_call_operand.vmem [shape: bf16[288,128], index: 1, kind: input, shape index: {}]   ;;  %s3384_s0 = inlined_call_operand.vmem [shape: bf16[512,288], index: 0, kind: input, shape index: {}]   ;;  %s3385_s2 = inlined_call_operand.vmem [shape: f32[1,128], index: 2, kind: input, shape index: {}]   ;;  %s3386_s3 = inlined_call_operand.vmem [shape: f32[512,128], index: 3, kind: output, shape index: {}]  }
   0x1   :  { %871 = vmatprep.subr.bf16.mxu0 %v2522_v0  ;;  %2086 = vmatprep.subr.bf16.mxu1 %v2522_v0  ;;  %v2119_v1 = vld [vmem:[%s3383_s1] sm:$0xff]   ;;  %v2120_v2 = vld [vmem:[%s3383_s1 + $0x8] sm:$0xff]   ;;  %v2121_v3 = vld [vmem:[%s3383_s1 + $0x10] sm:$0xff]  }
   0x2   :  { %872 = vmatpush1.bf16.msra.mxu0 %v2119_v1  ;;  %2102 = vmatpush1.bf16.msra.mxu1 %v2119_v1  ;;  %v2122_v4 = vld [vmem:[%s3383_s1 + $0x18] sm:$0xff]   ;;  %v2123_v5 = vld [vmem:[%s3383_s1 + $0x20] sm:$0xff]   ;;  %v2124_v7 = vld [vmem:[%s3383_s1 + $0x28] sm:$0xff]  }
   0x3   :  { %873 = vmatprep.subr.bf16.mxu0 %v2522_v0  ;;  %2087 = vmatprep.subr.bf16.mxu1 %v2522_v0  ;;  %v2137_v6 = vld [vmem:[%s3384_s0 + $0x4] ss:$12 sps:$4 sm:$0xff]   ;;  %v2126_v10 = vld [vmem:[%s3383_s1 + $0x38] sm:$0xff]   ;;  %v2128_v12 = vld [vmem:[%s3383_s1 + $0x48] sm:$0xff]  }
   0x4   :  { %v2140_v8 = vld [vmem:[%s3384_s0 + $0x244] ss:$12 sps:$4 sm:$0xff]   ;;  %903 = vmatprep.mubr.bf16.mxu0 %v2137_v6  ;;  %v2130_v14 = vld [vmem:[%s3383_s1 + $0x58] sm:$0xff]   ;;  %v2132_v16 = vld [vmem:[%s3383_s1 + $0x68] sm:$0xff]  }
   0x5   :  { %1095 = vmatprep.mubr.bf16.mxu1 %v2140_v8  ;;  %v2125_v9 = vld [vmem:[%s3383_s1 + $0x30] sm:$0xff]   ;;  %v2127_v11 = vld [vmem:[%s3383_s1 + $0x40] sm:$0xff]   ;;  %v2134_v18 = vld [vmem:[%s3383_s1 + $0x78] sm:$0xff]  }
   0x6   :  { %874 = vmatpush1.bf16.msra.mxu0 %v2120_v2  ;;  %2103 = vmatpush1.bf16.msra.mxu1 %v2120_v2  ;;  %v2129_v13 = vld [vmem:[%s3383_s1 + $0x50] sm:$0xff]   ;;  %v2131_v15 = vld [vmem:[%s3383_s1 + $0x60] sm:$0xff]   ;;  %v2142_v22 = vld [vmem:[%s3384_s0 + $0x1c] ss:$12 sps:$4 sm:$0xff]  }
   0x7   :  { %875 = vmatprep.subr.bf16.mxu0 %v2522_v0  ;;  %2088 = vmatprep.subr.bf16.mxu1 %v2522_v0  ;;  %v2133_v17 = vld [vmem:[%s3383_s1 + $0x70] sm:$0xff]   ;;  %v2141_v19 = vld [vmem:[%s3383_s1 + $0x80] sm:$0xff]   ;;  %v2144_v23 = vld [vmem:[%s3384_s0 + $0x25c] ss:$12 sps:$4 sm:$0xff]  }
   0x8   :  { %v2135_v20 = vld [vmem:[%s3384_s0] ss:$12 sps:$4 sm:$0xff]   ;;  %v2146_v25 = vld [vmem:[%s3384_s0 + $0x18] ss:$12 sps:$4 sm:$0xff]   ;;  %v2152_v29 = vld [vmem:[%s3384_s0 + $0x30] ss:$12 sps:$4 sm:$0xff]  }
   0x9   :  { %v2138_v21 = vld [vmem:[%s3384_s0 + $0x240] ss:$12 sps:$4 sm:$0xff]   ;;  %v2147_v26 = vld [vmem:[%s3384_s0 + $0x258] ss:$12 sps:$4 sm:$0xff]   ;;  %v2153_v30 = vld [vmem:[%s3384_s0 + $0x270] ss:$12 sps:$4 sm:$0xff]  }
   0xa   :  { %876 = vmatpush1.bf16.msra.mxu0 %v2121_v3  ;;  %2104 = vmatpush1.bf16.msra.mxu1 %v2121_v3  ;;  %v2166_v24 = vld [vmem:[%s3383_s1 + $0x88] sm:$0xff]   ;;  %v2148_v27 = vld [vmem:[%s3384_s0 + $0x34] ss:$12 sps:$4 sm:$0xff]   ;;  %v2160_v35 = vld [vmem:[%s3384_s0 + $0x64] ss:$12 sps:$4 sm:$0xff]  }
   0xb   :  { %877 = vmatprep.subr.bf16.mxu0 %v2522_v0  ;;  %2089 = vmatprep.subr.bf16.mxu1 %v2522_v0  ;;  %v2150_v28 = vld [vmem:[%s3384_s0 + $0x274] ss:$12 sps:$4 sm:$0xff]   ;;  %v2154_v31 = vld [vmem:[%s3384_s0 + $0x4c] ss:$12 sps:$4 sm:$0xff]   ;;  %v2162_v36 = vld [vmem:[%s3384_s0 + $0x2a4] ss:$12 sps:$4 sm:$0xff]  }
   0xc   :  { %v2156_v32 = vld [vmem:[%s3384_s0 + $0x28c] ss:$12 sps:$4 sm:$0xff]   ;;  %v2158_v33 = vld [vmem:[%s3384_s0 + $0x48] ss:$12 sps:$4 sm:$0xff]   ;;  %v2177_v45 = vld [vmem:[%s3384_s0 + $0x90] ss:$12 sps:$4 sm:$0xff]  }
   0xd   :  { %v2159_v34 = vld [vmem:[%s3384_s0 + $0x288] ss:$12 sps:$4 sm:$0xff]   ;;  %v2164_v37 = vld [vmem:[%s3384_s0 + $0x60] ss:$12 sps:$4 sm:$0xff]   ;;  %v2171_v41 = vld [vmem:[%s3384_s0 + $0x78] ss:$12 sps:$4 sm:$0xff]  }
   0xe   :  { %878 = vmatpush1.bf16.msra.mxu0 %v2122_v4  ;;  %2105 = vmatpush1.bf16.msra.mxu1 %v2122_v4  ;;  %v2165_v38 = vld [vmem:[%s3384_s0 + $0x2a0] ss:$12 sps:$4 sm:$0xff]   ;;  %v2167_v39 = vld [vmem:[%s3384_s0 + $0x7c] ss:$12 sps:$4 sm:$0xff]   ;;  %v2172_v42 = vld [vmem:[%s3384_s0 + $0x2b8] ss:$12 sps:$4 sm:$0xff]  }
   0xf   :  { %879 = vmatprep.subr.bf16.mxu0 %v2522_v0  ;;  %2090 = vmatprep.subr.bf16.mxu1 %v2522_v0  ;;  %v2169_v40 = vld [vmem:[%s3384_s0 + $0x2bc] ss:$12 sps:$4 sm:$0xff]   ;;  %v2173_v43 = vld [vmem:[%s3384_s0 + $0x94] ss:$12 sps:$4 sm:$0xff]   ;;  %v2179_v47 = vld [vmem:[%s3384_s0 + $0xac] ss:$12 sps:$4 sm:$0xff]  }
  0x10   :  { %v2175_v44 = vld [vmem:[%s3384_s0 + $0x2d4] ss:$12 sps:$4 sm:$0xff]   ;;  %v2178_v46 = vld [vmem:[%s3384_s0 + $0x2d0] ss:$12 sps:$4 sm:$0xff]   ;;  %v2181_v48 = vld [vmem:[%s3384_s0 + $0x2ec] ss:$12 sps:$4 sm:$0xff]  }
  0x11   :  { %v2183_v49 = vld [vmem:[%s3384_s0 + $0xa8] ss:$12 sps:$4 sm:$0xff]   ;;  %v2185_v51 = vld [vmem:[%s3384_s0 + $0xc4] ss:$12 sps:$4 sm:$0xff]   ;;  %v2188_v53 = vld [vmem:[%s3384_s0 + $0xc0] ss:$12 sps:$4 sm:$0xff]  }
  0x12   :  { %880 = vmatpush1.bf16.msra.mxu0 %v2123_v5  ;;  %2106 = vmatpush1.bf16.msra.mxu1 %v2123_v5  ;;  %v2184_v50 = vld [vmem:[%s3384_s0 + $0x2e8] ss:$12 sps:$4 sm:$0xff]   ;;  %v2189_v54 = vld [vmem:[%s3384_s0 + $0x20] ss:$12 sps:$4 sm:$0xff]   ;;  %v2192_v56 = vld [vmem:[%s3384_s0 + $0x38] ss:$12 sps:$4 sm:$0xff]  }
  0x13   :  { %881 = vmatprep.subr.bf16.mxu0 %v2522_v0  ;;  %2091 = vmatprep.subr.bf16.mxu1 %v2522_v0  ;;  %v2187_v52 = vld [vmem:[%s3384_s0 + $0x8] ss:$12 sps:$4 sm:$0xff]   ;;  %v2193_v57 = vld [vmem:[%s3384_s0 + $0xd8] ss:$12 sps:$4 sm:$0xff]   ;;  %v2194_v58 = vld [vmem:[%s3384_s0 + $0x50] ss:$12 sps:$4 sm:$0xff]  }
  0x14   :  { %v2190_v55 = vld [vmem:[%s3384_s0 + $0xdc] ss:$12 sps:$4 sm:$0xff]   ;;  %v2195_v59 = vld [vmem:[%s3384_s0 + $0xf4] ss:$12 sps:$4 sm:$0xff]   ;;  %v2200_v63 = vld [vmem:[%s3384_s0 + $0x10c] ss:$12 sps:$4 sm:$0xff]  }
  0x15   :  { %v2197_v60 = vld [vmem:[%s3384_s0 + $0x68] ss:$12 sps:$4 sm:$0xff]   ;;  %v2198_v61 = vld [vmem:[%s3384_s0 + $0xf0] ss:$12 sps:$4 sm:$0xff]   ;;  %v2199_v62 = vld [vmem:[%s3384_s0 + $0x80] ss:$12 sps:$4 sm:$0xff]  }
  0x16   :  { %882 = vmatpush1.bf16.msra.mxu0 %v2124_v7  ;;  %2107 = vmatpush1.bf16.msra.mxu1 %v2124_v7  ;;  %v2203_v1 = vld [vmem:[%s3384_s0 + $0x108] ss:$12 sps:$4 sm:$0xff]   ;;  %v2204_v2 = vld [vmem:[%s3384_s0 + $0xb0] ss:$12 sps:$4 sm:$0xff]   ;;  %v2208_v5 = vld [vmem:[%s3384_s0 + $0x120] ss:$12 sps:$4 sm:$0xff]  }
  0x17   :  { %883 = vmatprep.subr.bf16.mxu0 %v2522_v0  ;;  %2092 = vmatprep.subr.bf16.mxu1 %v2522_v0  ;;  %v2205_v3 = vld [vmem:[%s3384_s0 + $0x124] ss:$12 sps:$4 sm:$0xff]   ;;  %v2207_v4 = vld [vmem:[%s3384_s0 + $0xc8] ss:$12 sps:$4 sm:$0xff]   ;;  %v2209_v6 = vld [vmem:[%s3384_s0 + $0xe0] ss:$12 sps:$4 sm:$0xff]  }
  0x18   :  { %v2210_v7 = vld [vmem:[%s3384_s0 + $0x13c] ss:$12 sps:$4 sm:$0xff]   ;;  %v2212_v8 = vld [vmem:[%s3384_s0 + $0xf8] ss:$12 sps:$4 sm:$0xff]  }
  0x1a   :  { %884 = vmatpush1.bf16.msra.mxu0 %v2125_v9  ;;  %2108 = vmatpush1.bf16.msra.mxu1 %v2125_v9  ;;  %v2213_v9 = vld [vmem:[%s3384_s0 + $0x138] ss:$12 sps:$4 sm:$0xff]  }
  0x1b   :  { %885 = vmatprep.subr.bf16.mxu0 %v2522_v0  ;;  %2093 = vmatprep.subr.bf16.mxu1 %v2522_v0 }
  0x1e   :  { %886 = vmatpush1.bf16.msra.mxu0 %v2126_v10  ;;  %2109 = vmatpush1.bf16.msra.mxu1 %v2126_v10  ;;  %v2214_v10 = vld [vmem:[%s3384_s0 + $0x110] ss:$12 sps:$4 sm:$0xff]  }
  0x1f   :  { %887 = vmatprep.subr.bf16.mxu0 %v2522_v0  ;;  %2094 = vmatprep.subr.bf16.mxu1 %v2522_v0 }
  0x22   :  { %888 = vmatpush1.bf16.msra.mxu0 %v2127_v11  ;;  %2110 = vmatpush1.bf16.msra.mxu1 %v2127_v11  ;;  %v2215_v11 = vld [vmem:[%s3384_s0 + $0x154] ss:$12 sps:$4 sm:$0xff]  }
  0x23   :  { %889 = vmatprep.subr.bf16.mxu0 %v2522_v0  ;;  %2095 = vmatprep.subr.bf16.mxu1 %v2522_v0 }
  0x26   :  { %890 = vmatpush1.bf16.msra.mxu0 %v2128_v12  ;;  %2111 = vmatpush1.bf16.msra.mxu1 %v2128_v12  ;;  %v2217_v12 = vld [vmem:[%s3384_s0 + $0x128] ss:$12 sps:$4 sm:$0xff]  }
  0x27   :  { %891 = vmatprep.subr.bf16.mxu0 %v2522_v0  ;;  %2096 = vmatprep.subr.bf16.mxu1 %v2522_v0 }
  0x2a   :  { %892 = vmatpush1.bf16.msra.mxu0 %v2129_v13  ;;  %2112 = vmatpush1.bf16.msra.mxu1 %v2129_v13  ;;  %v2218_v13 = vld [vmem:[%s3384_s0 + $0x150] ss:$12 sps:$4 sm:$0xff]  }
  0x2b   :  { %893 = vmatprep.subr.bf16.mxu0 %v2522_v0  ;;  %2097 = vmatprep.subr.bf16.mxu1 %v2522_v0 }
  0x2e   :  { %894 = vmatpush1.bf16.msra.mxu0 %v2130_v14  ;;  %2113 = vmatpush1.bf16.msra.mxu1 %v2130_v14  ;;  %v2219_v14 = vld [vmem:[%s3384_s0 + $0x140] ss:$12 sps:$4 sm:$0xff]  }
  0x2f   :  { %895 = vmatprep.subr.bf16.mxu0 %v2522_v0  ;;  %2098 = vmatprep.subr.bf16.mxu1 %v2522_v0 }
  0x32   :  { %896 = vmatpush1.bf16.msra.mxu0 %v2131_v15  ;;  %2114 = vmatpush1.bf16.msra.mxu1 %v2131_v15  ;;  %v2220_v15 = vld [vmem:[%s3384_s0 + $0x16c] ss:$12 sps:$4 sm:$0xff]  }
  0x33   :  { %897 = vmatprep.subr.bf16.mxu0 %v2522_v0  ;;  %2099 = vmatprep.subr.bf16.mxu1 %v2522_v0 }
  0x36   :  { %898 = vmatpush1.bf16.msra.mxu0 %v2132_v16  ;;  %2115 = vmatpush1.bf16.msra.mxu1 %v2132_v16  ;;  %v2222_v16 = vld [vmem:[%s3384_s0 + $0x158] ss:$12 sps:$4 sm:$0xff]  }
  0x37   :  { %899 = vmatprep.subr.bf16.mxu0 %v2522_v0  ;;  %2100 = vmatprep.subr.bf16.mxu1 %v2522_v0 }
  0x3a   :  { %900 = vmatpush1.bf16.msra.mxu0 %v2133_v17  ;;  %2116 = vmatpush1.bf16.msra.mxu1 %v2133_v17  ;;  %v2223_v17 = vld [vmem:[%s3384_s0 + $0x168] ss:$12 sps:$4 sm:$0xff]  }
  0x3b   :  { %901 = vmatprep.subr.bf16.mxu0 %v2522_v0  ;;  %2101 = vmatprep.subr.bf16.mxu1 %v2522_v0  ;;  %v2202_v0 = vld [vmem:[%s3384_s0 + $0x98] ss:$12 sps:$4 sm:$0xff]  }
  0x3e   :  { %902 = vmatpush1.bf16.msra.mxu0 %v2134_v18  ;;  %2117 = vmatpush1.bf16.msra.mxu1 %v2134_v18  ;;  %v2224_v18 = vld [vmem:[%s3384_s0 + $0x170] ss:$12 sps:$4 sm:$0xff]  }
  0x3f   :  { %2018 = vmatprep.subr.bf16.mxu1 %v2141_v19 }
  0x41   :  { %904 = vmatmul.mubr.bf16.vlgmr.msra.gmra.mrb[0].mxu0 %v2135_v20  ;;  %1096 = vmatmul.mubr.bf16.vlgmr.msra.gmra.mrb[0].mxu1 %v2138_v21  ;;  %v2227_v20 = vld [vmem:[%s3384_s0 + $0x188] ss:$12 sps:$4 sm:$0xff]   ;;  %v2228_v21 = vld [vmem:[%s3384_s0 + $0x180] ss:$12 sps:$4 sm:$0xff]  }
  0x42   :  { %2019 = vmatpush3.bf16.msra.mxu1 %v2141_v19  ;;  %911 = vmatprep.mubr.bf16.mxu0 %v2142_v22  ;;  %v2225_v19 = vld [vmem:[%s3384_s0 + $0x184] ss:$12 sps:$4 sm:$0xff]   ;;  %v2229_v22 = vld [vmem:[%s3384_s0 + $0x1a0] ss:$12 sps:$4 sm:$0xff]  }
  0x43   :  { %1103 = vmatprep.mubr.bf16.mxu1 %v2144_v23  ;;  %2020 = vmatprep.subr.bf16.mxu1 %v2166_v24  ;;  %v2230_v23 = vld [vmem:[%s3384_s0 + $0x19c] ss:$12 sps:$4 sm:$0xff]  }
  0x46   :  { %2021 = vmatpush3.bf16.msra.mxu1 %v2166_v24  ;;  %v2232_v24 = vld [vmem:[%s3384_s0 + $0x1b8] ss:$12 sps:$4 sm:$0xff]  }
  0x49   :  { %912 = vmatmul.mubr.bf16.gmra.mrb[4].mxu0 %v2146_v25  ;;  %1104 = vmatmul.mubr.bf16.gmra.mrb[4].mxu1 %v2147_v26  ;;  %v2233_v25 = vld [vmem:[%s3384_s0 + $0x198] ss:$12 sps:$4 sm:$0xff]   ;;  %v2234_v26 = vld [vmem:[%s3384_s0 + $0x1d0] ss:$12 sps:$4 sm:$0xff]  }
  0x4a   :  { %919 = vmatprep.mubr.bf16.mxu0 %v2148_v27  ;;  %1111 = vmatprep.mubr.bf16.mxu1 %v2150_v28  ;;  %v2235_v27 = vld [vmem:[%s3384_s0 + $0x1b4] ss:$12 sps:$4 sm:$0xff]  }
  0x4b   :  { %v2237_v28 = vld [vmem:[%s3384_s0 + $0x1e8] ss:$12 sps:$4 sm:$0xff]  }
  0x51   :  { %920 = vmatmul.mubr.bf16.gmra.mrb[8].mxu0 %v2152_v29  ;;  %1112 = vmatmul.mubr.bf16.gmra.mrb[8].mxu1 %v2153_v30  ;;  %v2238_v29 = vld [vmem:[%s3384_s0 + $0x1b0] ss:$12 sps:$4 sm:$0xff]   ;;  %v2239_v30 = vld [vmem:[%s3384_s0 + $0x200] ss:$12 sps:$4 sm:$0xff]  }
  0x52   :  { %927 = vmatprep.mubr.bf16.mxu0 %v2154_v31  ;;  %1119 = vmatprep.mubr.bf16.mxu1 %v2156_v32  ;;  %v2240_v31 = vld [vmem:[%s3384_s0 + $0x1cc] ss:$12 sps:$4 sm:$0xff]  }
  0x53   :  { %v2242_v32 = vld [vmem:[%s3384_s0 + $0x218] ss:$12 sps:$4 sm:$0xff]  }
  0x59   :  { %928 = vmatmul.mubr.bf16.gmra.mrb[12].mxu0 %v2158_v33  ;;  %1120 = vmatmul.mubr.bf16.gmra.mrb[12].mxu1 %v2159_v34  ;;  %v2243_v33 = vld [vmem:[%s3384_s0 + $0x1c8] ss:$12 sps:$4 sm:$0xff]   ;;  %v2244_v34 = vld [vmem:[%s3384_s0 + $0x230] ss:$12 sps:$4 sm:$0xff]  }
  0x5a   :  { %935 = vmatprep.mubr.bf16.mxu0 %v2160_v35  ;;  %1127 = vmatprep.mubr.bf16.mxu1 %v2162_v36  ;;  %v2245_v35 = vld [vmem:[%s3384_s0 + $0x1e4] ss:$12 sps:$4 sm:$0xff]   ;;  %v2247_v36 = vld [vmem:[%s3384_s0 + $0x248] ss:$12 sps:$4 sm:$0xff]  }
  0x61   :  { %936 = vmatmul.mubr.bf16.gmra.mrb[16].mxu0 %v2164_v37  ;;  %1128 = vmatmul.mubr.bf16.gmra.mrb[16].mxu1 %v2165_v38  ;;  %v2248_v37 = vld [vmem:[%s3384_s0 + $0x1e0] ss:$12 sps:$4 sm:$0xff]  }
  0x62   :  { %943 = vmatprep.mubr.bf16.mxu0 %v2167_v39  ;;  %1135 = vmatprep.mubr.bf16.mxu1 %v2169_v40  ;;  %v2249_v38 = vld [vmem:[%s3384_s0 + $0x260] ss:$12 sps:$4 sm:$0xff]   ;;  %v2250_v39 = vld [vmem:[%s3384_s0 + $0x1fc] ss:$12 sps:$4 sm:$0xff]   ;;  %v2252_v40 = vld [vmem:[%s3384_s0 + $0x278] ss:$12 sps:$4 sm:$0xff]  }
  0x69   :  { %944 = vmatmul.mubr.bf16.gmra.mrb[20].mxu0 %v2171_v41  ;;  %1136 = vmatmul.mubr.bf16.gmra.mrb[20].mxu1 %v2172_v42  ;;  %v2253_v41 = vld [vmem:[%s3384_s0 + $0x1f8] ss:$12 sps:$4 sm:$0xff]   ;;  %v2254_v42 = vld [vmem:[%s3384_s0 + $0x290] ss:$12 sps:$4 sm:$0xff]  }
  0x6a   :  { %951 = vmatprep.mubr.bf16.mxu0 %v2173_v43  ;;  %1143 = vmatprep.mubr.bf16.mxu1 %v2175_v44  ;;  %v2255_v43 = vld [vmem:[%s3384_s0 + $0x214] ss:$12 sps:$4 sm:$0xff]  }
  0x6b   :  { %v2257_v44 = vld [vmem:[%s3384_s0 + $0x2a8] ss:$12 sps:$4 sm:$0xff]  }
  0x71   :  { %952 = vmatmul.mubr.bf16.gmra.mrb[24].mxu0 %v2177_v45  ;;  %1144 = vmatmul.mubr.bf16.gmra.mrb[24].mxu1 %v2178_v46  ;;  %v2258_v45 = vld [vmem:[%s3384_s0 + $0x210] ss:$12 sps:$4 sm:$0xff]   ;;  %v2259_v46 = vld [vmem:[%s3384_s0 + $0x2c0] ss:$12 sps:$4 sm:$0xff]  }
  0x72   :  { %959 = vmatprep.mubr.bf16.mxu0 %v2179_v47  ;;  %1151 = vmatprep.mubr.bf16.mxu1 %v2181_v48  ;;  %v2260_v47 = vld [vmem:[%s3384_s0 + $0x22c] ss:$12 sps:$4 sm:$0xff]  }
  0x73   :  { %v2262_v48 = vld [vmem:[%s3384_s0 + $0x2d8] ss:$12 sps:$4 sm:$0xff]  }
  0x79   :  { %960 = vmatmul.mubr.bf16.gmra.mrb[28].mxu0 %v2183_v49  ;;  %1152 = vmatmul.mubr.bf16.gmra.mrb[28].mxu1 %v2184_v50  ;;  %v2263_v49 = vld [vmem:[%s3384_s0 + $0x228] ss:$12 sps:$4 sm:$0xff]   ;;  %v2264_v50 = vld [vmem:[%s3384_s0 + $0x2f0] ss:$12 sps:$4 sm:$0xff]  }
  0x7a   :  { %967 = vmatprep.mubr.bf16.mxu0 %v2185_v51  ;;  %2022 = vmatprep.mubr.msk.bf16.mxu1 %vm774_vm0, %v2187_v52 }
  0x81   :  { %968 = vmatmul.mubr.bf16.gmra.mrb[32].mxu0 %v2188_v53  ;;  %2023 = vmatmul.mubr.msk.bf16.vlgmr.msra.gmra.mrb[32].mxu1 %vm774_vm0, %v2189_v54 }
  0x82   :  { %975 = vmatprep.mubr.bf16.mxu0 %v2190_v55  ;;  %2026 = vmatprep.mubr.msk.bf16.mxu1 %vm774_vm0, %v2192_v56 }
  0x89   :  { %976 = vmatmul.mubr.bf16.gmra.mrb[36].mxu0 %v2193_v57  ;;  %2027 = vmatmul.mubr.msk.bf16.gmra.mrb[36].mxu1 %vm774_vm0, %v2194_v58 }
  0x8a   :  { %983 = vmatprep.mubr.bf16.mxu0 %v2195_v59  ;;  %2030 = vmatprep.mubr.msk.bf16.mxu1 %vm774_vm0, %v2197_v60 }
  0x91   :  { %984 = vmatmul.mubr.bf16.gmra.mrb[40].mxu0 %v2198_v61  ;;  %2031 = vmatmul.mubr.msk.bf16.gmra.mrb[40].mxu1 %vm774_vm0, %v2199_v62 }
  0x92   :  { %991 = vmatprep.mubr.bf16.mxu0 %v2200_v63  ;;  %2034 = vmatprep.mubr.msk.bf16.mxu1 %vm774_vm0, %v2202_v0 }
  0x99   :  { %992 = vmatmul.mubr.bf16.gmra.mrb[44].mxu0 %v2203_v1  ;;  %2035 = vmatmul.mubr.msk.bf16.gmra.mrb[44].mxu1 %vm774_vm0, %v2204_v2 }
  0x9a   :  { %999 = vmatprep.mubr.bf16.mxu0 %v2205_v3  ;;  %2038 = vmatprep.mubr.msk.bf16.mxu1 %vm774_vm0, %v2207_v4 }
  0xa1   :  { %1000 = vmatmul.mubr.bf16.gmra.mrb[48].mxu0 %v2208_v5  ;;  %2039 = vmatmul.mubr.msk.bf16.gmra.mrb[48].mxu1 %vm774_vm0, %v2209_v6 }
  0xa2   :  { %1007 = vmatprep.mubr.bf16.mxu0 %v2210_v7  ;;  %2042 = vmatprep.mubr.msk.bf16.mxu1 %vm774_vm0, %v2212_v8 }
  0xa9   :  { %1008 = vmatmul.mubr.bf16.gmra.mrb[52].mxu0 %v2213_v9  ;;  %2043 = vmatmul.mubr.msk.bf16.gmra.mrb[52].mxu1 %vm774_vm0, %v2214_v10 }
  0xaa   :  { %1015 = vmatprep.mubr.bf16.mxu0 %v2215_v11  ;;  %2046 = vmatprep.mubr.msk.bf16.mxu1 %vm774_vm0, %v2217_v12 }
  0xb1   :  { %1016 = vmatmul.mubr.bf16.gmra.mrb[56].mxu0 %v2218_v13  ;;  %2047 = vmatmul.mubr.msk.bf16.gmra.mrb[56].mxu1 %vm774_vm0, %v2219_v14 }
  0xb2   :  { %1023 = vmatprep.mubr.bf16.mxu0 %v2220_v15  ;;  %2050 = vmatprep.mubr.msk.bf16.mxu1 %vm774_vm0, %v2222_v16 }
  0xb9   :  { %1024 = vmatmul.mubr.bf16.gmra.mrb[60].mxu0 %v2223_v17  ;;  %2051 = vmatmul.mubr.msk.bf16.gmra.mrb[60].mxu1 %vm774_vm0, %v2224_v18 }
  0xba   :  { %1031 = vmatprep.mubr.bf16.mxu0 %v2225_v19  ;;  %2054 = vmatprep.mubr.msk.bf16.mxu1 %vm774_vm0, %v2227_v20 }
  0xc1   :  { %1032 = vmatmul.mubr.bf16.gmra.mrb[64].mxu0 %v2228_v21  ;;  %2055 = vmatmul.mubr.msk.bf16.gmra.mrb[64].mxu1 %vm774_vm0, %v2229_v22 }
  0xc2   :  { %1039 = vmatprep.mubr.bf16.mxu0 %v2230_v23  ;;  %2058 = vmatprep.mubr.msk.bf16.mxu1 %vm774_vm0, %v2232_v24 }
  0xc9   :  { %1040 = vmatmul.mubr.bf16.gmra.mrb[68].mxu0 %v2233_v25  ;;  %2059 = vmatmul.mubr.msk.bf16.gmra.mrb[68].mxu1 %vm774_vm0, %v2234_v26 }
  0xca   :  { %1047 = vmatprep.mubr.bf16.mxu0 %v2235_v27  ;;  %2062 = vmatprep.mubr.msk.bf16.mxu1 %vm774_vm0, %v2237_v28 }
  0xd1   :  { %1048 = vmatmul.mubr.bf16.gmra.mrb[72].mxu0 %v2238_v29  ;;  %2063 = vmatmul.mubr.msk.bf16.gmra.mrb[72].mxu1 %vm774_vm0, %v2239_v30 }
  0xd2   :  { %1055 = vmatprep.mubr.bf16.mxu0 %v2240_v31  ;;  %2066 = vmatprep.mubr.msk.bf16.mxu1 %vm774_vm0, %v2242_v32 }
  0xd9   :  { %1056 = vmatmul.mubr.bf16.gmra.mrb[76].mxu0 %v2243_v33  ;;  %2067 = vmatmul.mubr.msk.bf16.gmra.mrb[76].mxu1 %vm774_vm0, %v2244_v34 }
  0xda   :  { %1063 = vmatprep.mubr.bf16.mxu0 %v2245_v35  ;;  %2070 = vmatprep.mubr.msk.bf16.mxu1 %vm774_vm0, %v2247_v36 }
  0xe1   :  { %1064 = vmatmul.mubr.bf16.gmra.mrb[80].mxu0 %v2248_v37  ;;  %2071 = vmatmul.mubr.msk.bf16.gmra.mrb[80].mxu1 %vm774_vm0, %v2249_v38 }
  0xe2   :  { %1071 = vmatprep.mubr.bf16.mxu0 %v2250_v39  ;;  %2074 = vmatprep.mubr.msk.bf16.mxu1 %vm774_vm0, %v2252_v40 }
  0xe9   :  { %1072 = vmatmul.mubr.bf16.gmra.mrb[84].mxu0 %v2253_v41  ;;  %2075 = vmatmul.mubr.msk.bf16.gmra.mrb[84].mxu1 %vm774_vm0, %v2254_v42 }
  0xea   :  { %1079 = vmatprep.mubr.bf16.mxu0 %v2255_v43  ;;  %2078 = vmatprep.mubr.msk.bf16.mxu1 %vm774_vm0, %v2257_v44 }
  0xf1   :  { %1080 = vmatmul.mubr.bf16.gmra.mrb[88].mxu0 %v2258_v45  ;;  %2079 = vmatmul.mubr.msk.bf16.gmra.mrb[88].mxu1 %vm774_vm0, %v2259_v46 }
  0xf2   :  { %1087 = vmatprep.mubr.bf16.mxu0 %v2260_v47  ;;  %2082 = vmatprep.mubr.msk.bf16.mxu1 %vm774_vm0, %v2262_v48 }
  0xf9   :  { %1088 = vmatmul.mubr.bf16.gmra.mrb[92].mxu0 %v2263_v49  ;;  %2083 = vmatmul.mubr.msk.bf16.gmra.mrb[92].mxu1 %vm774_vm0, %v2264_v50 }
 0x114   :  { %v2949_v51 = vpop.f32.mrb[0].mxu0  ;;  %v2951_v52 = vpop.f32.mrb[0].mxu1 }
 0x115   :  { %v907_v53 = vpop.f32.mrb[1].mxu0  ;;  %v1099_v54 = vpop.f32.mrb[1].mxu1 }
 0x116   :  { %v2953_v55 = vpop.f32.mrb[2].mxu0  ;;  %v2955_v56 = vpop.f32.mrb[2].mxu1  ;;  %v3012_v53 = vld [vmem:[%s3385_s2] ss:$0 sm:$0xff] }
 0x117   :  { %v910_v57 = vpop.f32.mrb[3].mxu0  ;;  %v1102_v58 = vpop.f32.mrb[3].mxu1 }
 0x118   :  { %v906_v57 = vadd.f32 %v3012_v53, %v2949_v51 }
 0x11c   :  { %v913_v59 = vpop.f32.mrb[4].mxu0  ;;  %v2957_v60 = vpop.f32.mrb[4].mxu1 }
 0x11d   :  { %v915_v61 = vpop.f32.mrb[5].mxu0  ;;  %v1107_v62 = vpop.f32.mrb[5].mxu1  ;;  %v914_v54 = vadd.f32 %v3012_v53, %v913_v59 }
 0x11e   :  { %v916_v63 = vpop.f32.mrb[6].mxu0  ;;  %v2959_v0 = vpop.f32.mrb[6].mxu1 }
 0x11f   :  { %v918_v1 = vpop.f32.mrb[7].mxu0  ;;  %v1110_v2 = vpop.f32.mrb[7].mxu1  ;;  %v917_v62 = vadd.f32 %v3012_v53, %v916_v63 }
 0x124   :  { %v2961_v3 = vpop.f32.mrb[8].mxu0  ;;  %v2963_v4 = vpop.f32.mrb[8].mxu1 }
 0x125   :  { %v923_v5 = vpop.f32.mrb[9].mxu0  ;;  %v1115_v6 = vpop.f32.mrb[9].mxu1 }
 0x126   :  { %v2965_v7 = vpop.f32.mrb[10].mxu0  ;;  %v2967_v8 = vpop.f32.mrb[10].mxu1  ;;  %v909_v6 = vadd.f32 %v3012_v53, %v2953_v55  ;;  %v922_v55 = vadd.f32 %v3012_v53, %v2961_v3 }
 0x127   :  { %v926_v9 = vpop.f32.mrb[11].mxu0  ;;  %v1118_v10 = vpop.f32.mrb[11].mxu1 }
 0x12c   :  { %v2969_v11 = vpop.f32.mrb[12].mxu0  ;;  %v2971_v12 = vpop.f32.mrb[12].mxu1 }
 0x12d   :  { %v931_v13 = vpop.f32.mrb[13].mxu0  ;;  %v1123_v14 = vpop.f32.mrb[13].mxu1 }
 0x12e   :  { %v2973_v15 = vpop.f32.mrb[14].mxu0  ;;  %v2975_v16 = vpop.f32.mrb[14].mxu1 }
 0x12f   :  { %v934_v17 = vpop.f32.mrb[15].mxu0  ;;  %v1126_v18 = vpop.f32.mrb[15].mxu1 }
 0x134   :  { %v2977_v19 = vpop.f32.mrb[16].mxu0  ;;  %v2979_v20 = vpop.f32.mrb[16].mxu1 }
 0x135   :  { %v939_v21 = vpop.f32.mrb[17].mxu0  ;;  %v1131_v22 = vpop.f32.mrb[17].mxu1 }
 0x136   :  { %v2981_v23 = vpop.f32.mrb[18].mxu0  ;;  %v2983_v24 = vpop.f32.mrb[18].mxu1 }
 0x137   :  { %v942_v25 = vpop.f32.mrb[19].mxu0  ;;  %v1134_v26 = vpop.f32.mrb[19].mxu1 }
 0x13c   :  { %v2985_v27 = vpop.f32.mrb[20].mxu0  ;;  %v2987_v28 = vpop.f32.mrb[20].mxu1 }
 0x13d   :  { %v947_v29 = vpop.f32.mrb[21].mxu0  ;;  %v1139_v30 = vpop.f32.mrb[21].mxu1 }
 0x13e   :  { %v2989_v31 = vpop.f32.mrb[22].mxu0  ;;  %v2991_v32 = vpop.f32.mrb[22].mxu1  ;;  %v930_v29 = vadd.f32 %v3012_v53, %v2969_v11  ;;  %v925_v11 = vadd.f32 %v3012_v53, %v2965_v7 }
 0x13f   :  { %v950_v33 = vpop.f32.mrb[23].mxu0  ;;  %v1142_v34 = vpop.f32.mrb[23].mxu1 }
 0x144   :  { %v2993_v35 = vpop.f32.mrb[24].mxu0  ;;  %v2995_v36 = vpop.f32.mrb[24].mxu1 }
 0x145   :  { %v955_v37 = vpop.f32.mrb[25].mxu0  ;;  %v1147_v38 = vpop.f32.mrb[25].mxu1 }
 0x146   :  { %v2997_v39 = vpop.f32.mrb[26].mxu0  ;;  %v2999_v40 = vpop.f32.mrb[26].mxu1  ;;  %v933_v38 = vadd.f32 %v3012_v53, %v2973_v15 }
 0x147   :  { %v958_v41 = vpop.f32.mrb[27].mxu0  ;;  %v1150_v42 = vpop.f32.mrb[27].mxu1 }
 0x14c   :  { %v3001_v43 = vpop.f32.mrb[28].mxu0  ;;  %v3003_v44 = vpop.f32.mrb[28].mxu1 }
 0x14d   :  { %v963_v45 = vpop.f32.mrb[29].mxu0  ;;  %v1155_v46 = vpop.f32.mrb[29].mxu1 }
 0x14e   :  { %v3005_v47 = vpop.f32.mrb[30].mxu0  ;;  %v3007_v48 = vpop.f32.mrb[30].mxu1 }
 0x14f   :  { %v966_v49 = vpop.f32.mrb[31].mxu0  ;;  %v1158_v50 = vpop.f32.mrb[31].mxu1 }
 0x154   :  { %v3017_v58 = vpop.f32.mrb[32].mxu0  ;;  %v2024_v61 = vpop.f32.mrb[32].mxu1 }
 0x155   :  { %v1203_v1 = vadd.f32 %v2024_v61, %v914_v54  ;;  %v971_v2 = vpop.f32.mrb[33].mxu0  ;;  %v1194_v5 = vpop.f32.mrb[33].mxu1 }
 0x156   :  { %v1195_v9 = vadd.f32 %v1194_v5, %v906_v57  ;;  %v3022_v10 = vpop.f32.mrb[34].mxu0  ;;  %v2025_v13 = vpop.f32.mrb[34].mxu1 }
 0x157   :  { %v1451_v14 = vsub.f32 0.0, %v1203_v1  ;;  %v1206_v59 = vadd.f32 %v2025_v13, %v917_v62  ;;  %v974_v17 = vpop.f32.mrb[35].mxu0  ;;  %v1197_v18 = vpop.f32.mrb[35].mxu1  ;;  %v938_v13 = vadd.f32 %v3012_v53, %v2977_v19 }
 0x158   :  { %v1449_v51 = vsub.f32 0.0, %v1195_v9  ;;  %v1198_v21 = vadd.f32 %v1197_v18, %v909_v6  ;;  %v946_v9 = vadd.f32 %v3012_v53, %v2985_v27  ;;  %v941_v27 = vadd.f32 %v3012_v53, %v2981_v23 }
 0x159   :  { %v1517_v22 = vmul.f32 1.442695, %v1451_v14  ;;  %v1452_v25 = vsub.f32 0.0, %v1206_v59 }
 0x15a   :  { %v1513_v26 = vmul.f32 1.442695, %v1449_v51  ;;  %v1450_v63 = vsub.f32 0.0, %v1198_v21  ;;  %v949_v51 = vadd.f32 %v3012_v53, %v2989_v31 }
 0x15b   :  { %2265 = vpow2.f32 %v1517_v22  ;;  %v1519_v30 = vmul.f32 1.442695, %v1452_v25 }
 0x15c   :  { %2267 = vpow2.f32 %v1513_v26  ;;  %v1515_v33 = vmul.f32 1.442695, %v1450_v63  ;;  %v3028_v34 = vpop.f32.mrb[36].mxu0  ;;  %v2028_v37 = vpop.f32.mrb[36].mxu1 }
 0x15d   :  { %2269 = vpow2.f32 %v1519_v30  ;;  %v1219_v41 = vadd.f32 %v2028_v37, %v930_v29  ;;  %v979_v42 = vpop.f32.mrb[37].mxu0  ;;  %v1210_v45 = vpop.f32.mrb[37].mxu1 }
 0x15e   :  { %2271 = vpow2.f32 %v1515_v33  ;;  %v1211_v46 = vadd.f32 %v1210_v45, %v922_v55  ;;  %v3034_v49 = vpop.f32.mrb[38].mxu0  ;;  %v2029_v3 = vpop.f32.mrb[38].mxu1 }
 0x15f   :  { %v1455_v50 = vsub.f32 0.0, %v1219_v41  ;;  %v1222_v54 = vadd.f32 %v2029_v3, %v933_v38  ;;  %v982_v57 = vpop.f32.mrb[39].mxu0  ;;  %v1213_v61 = vpop.f32.mrb[39].mxu1 }
 0x160   :  { %v1453_v62 = vsub.f32 0.0, %v1211_v46  ;;  %v1214_v1 = vadd.f32 %v1213_v61, %v925_v11  ;;  %v962_v61 = vadd.f32 %v3012_v53, %v3001_v43 }
 0x161   :  { %v1525_v2 = vmul.f32 1.442695, %v1455_v50  ;;  %v1456_v15 = vsub.f32 0.0, %v1222_v54 }
 0x162   :  { %v1521_v5 = vmul.f32 1.442695, %v1453_v62  ;;  %v1454_v6 = vsub.f32 0.0, %v1214_v1  ;;  %v954_v1 = vadd.f32 %v3012_v53, %v2993_v35 }
 0x163   :  { %2273 = vpow2.f32 %v1525_v2  ;;  %v1527_v7 = vmul.f32 1.442695, %v1456_v15 }
 0x164   :  { %2275 = vpow2.f32 %v1521_v5  ;;  %v1523_v14 = vmul.f32 1.442695, %v1454_v6  ;;  %v3040_v59 = vpop.f32.mrb[40].mxu0  ;;  %v2032_v17 = vpop.f32.mrb[40].mxu1 }
 0x165   :  { %v2266_v18 = vpop.eup %2265  ;;  %2277 = vpow2.f32 %v1527_v7  ;;  %v1235_v21 = vadd.f32 %v2032_v17, %v946_v9  ;;  %v987_v22 = vpop.f32.mrb[41].mxu0  ;;  %v965_v17 = vadd.f32 %v3012_v53, %v3005_v47 }
 0x166   :  { %v1226_v25 = vpop.f32.mrb[41].mxu1  ;;  %v2268_v26 = vpop.eup %2267  ;;  %v1643_v63 = vadd.f32 1.0, %v2266_v18  ;;  %2279 = vpow2.f32 %v1523_v14  ;;  %v957_v22 = vadd.f32 %v3012_v53, %v2997_v39  ;;  %v978_v39 = vadd.f32 %v3012_v53, %v3028_v34 }
 0x167   :  { %v1227_v19 = vadd.f32 %v1226_v25, %v938_v13  ;;  %v3046_v29 = vpop.f32.mrb[42].mxu0  ;;  %v2033_v30 = vpop.f32.mrb[42].mxu1  ;;  %v1641_v33 = vadd.f32 1.0, %v2268_v26  ;;  %v1459_v37 = vsub.f32 0.0, %v1235_v21 }
 0x168   :  { %v2270_v55 = vpop.eup %2269  ;;  %v1238_v38 = vadd.f32 %v2033_v30, %v949_v51  ;;  %v990_v41 = vpop.f32.mrb[43].mxu0  ;;  %2281 = vrcp.f32 %v1643_v63 }
 0x169   :  { %v1229_v31 = vpop.f32.mrb[43].mxu1  ;;  %v2272_v42 = vpop.eup %2271  ;;  %v1644_v45 = vadd.f32 1.0, %v2270_v55  ;;  %v1457_v11 = vsub.f32 0.0, %v1227_v19  ;;  %2283 = vrcp.f32 %v1641_v33  ;;  %v1533_v23 = vmul.f32 1.442695, %v1459_v37 }
 0x16a   :  { %v1230_v46 = vadd.f32 %v1229_v31, %v941_v27  ;;  %v1642_v3 = vadd.f32 1.0, %v2272_v42  ;;  %v1460_v50 = vsub.f32 0.0, %v1238_v38 }
 0x16b   :  { %2285 = vrcp.f32 %v1644_v45  ;;  %v1529_v54 = vmul.f32 1.442695, %v1457_v11 }
 0x16c   :  { %v1458_v57 = vsub.f32 0.0, %v1230_v46  ;;  %2287 = vrcp.f32 %v1642_v3  ;;  %v1535_v62 = vmul.f32 1.442695, %v1460_v50  ;;  %v3052_v15 = vpop.f32.mrb[44].mxu0  ;;  %v2036_v5 = vpop.f32.mrb[44].mxu1  ;;  %v970_v3 = vadd.f32 %v3012_v53, %v3017_v58 }
 0x16d   :  { %2289 = vpow2.f32 %v1533_v23  ;;  %v2274_v6 = vpop.eup %2273  ;;  %v1251_v9 = vadd.f32 %v2036_v5, %v962_v61  ;;  %v995_v7 = vpop.f32.mrb[45].mxu0  ;;  %v981_v5 = vadd.f32 %v3012_v53, %v3034_v49 }
 0x16e   :  { %v1531_v2 = vmul.f32 1.442695, %v1458_v57  ;;  %2291 = vpow2.f32 %v1529_v54  ;;  %v1242_v13 = vpop.f32.mrb[45].mxu1  ;;  %v2276_v14 = vpop.eup %2275  ;;  %v1647_v43 = vadd.f32 1.0, %v2274_v6 }
 0x16f   :  { %2293 = vpow2.f32 %v1535_v62  ;;  %v1243_v18 = vadd.f32 %v1242_v13, %v954_v1  ;;  %v3056_v51 = vpop.f32.mrb[46].mxu0  ;;  %v2037_v35 = vpop.f32.mrb[46].mxu1  ;;  %v1645_v25 = vadd.f32 1.0, %v2276_v14  ;;  %v1463_v26 = vsub.f32 0.0, %v1251_v9 }
 0x170   :  { %v2278_v21 = vpop.eup %2277  ;;  %2295 = vpow2.f32 %v1531_v2  ;;  %v998_v27 = vpop.f32.mrb[47].mxu0  ;;  %v1254_v47 = vadd.f32 %v2037_v35, %v965_v17  ;;  %v973_v2 = vadd.f32 %v3012_v53, %v3022_v10 }
 0x171   :  { %v1245_v63 = vpop.f32.mrb[47].mxu1  ;;  %v2280_v19 = vpop.eup %2279  ;;  %2297 = vrcp.f32 %v1647_v43  ;;  %v1648_v30 = vadd.f32 1.0, %v2278_v21  ;;  %v1461_v55 = vsub.f32 0.0, %v1243_v18  ;;  %v1541_v37 = vmul.f32 1.442695, %v1463_v26 }
 0x172   :  { %2299 = vrcp.f32 %v1645_v25  ;;  %v1646_v33 = vadd.f32 1.0, %v2280_v19  ;;  %v1246_v38 = vadd.f32 %v1245_v63, %v957_v22  ;;  %v2282_v41 = vpop.eup %2281  ;;  %v1464_v42 = vsub.f32 0.0, %v1254_v47 }
 0x173   :  { %2301 = vrcp.f32 %v1648_v30  ;;  %v1537_v31 = vmul.f32 1.442695, %v1461_v55  ;;  %v2284_v45 = vpop.eup %2283  ;;  %1771 = vst [vmem:[%s3386_s3 + $0x10] sm:$0xff] %v2282_v41  ;;  %v986_v41 = vadd.f32 %v3012_v53, %v3040_v59  ;;  %v997_v59 = vadd.f32 %v3012_v53, %v3056_v51 }
 0x174   :  { %2303 = vrcp.f32 %v1646_v33  ;;  %v1462_v11 = vsub.f32 0.0, %v1246_v38  ;;  %1769 = vst [vmem:[%s3386_s3] sm:$0xff] %v2284_v45  ;;  %v1543_v23 = vmul.f32 1.442695, %v1464_v42  ;;  %v3070_v50 = vpop.f32.mrb[48].mxu0  ;;  %v2040_v54 = vpop.f32.mrb[48].mxu1  ;;  %v994_v33 = vadd.f32 %v3012_v53, %v3052_v15 }
 0x175   :  { %v2286_v46 = vpop.eup %2285  ;;  %2305 = vpow2.f32 %v1541_v37  ;;  %v1267_v61 = vadd.f32 %v2040_v54, %v978_v39  ;;  %v1003_v62 = vpop.f32.mrb[49].mxu0 }
 0x176   :  { %v2288_v57 = vpop.eup %2287  ;;  %1772 = vst [vmem:[%s3386_s3 + $0x18] sm:$0xff] %v2286_v46  ;;  %2307 = vpow2.f32 %v1537_v31  ;;  %v1539_v34 = vmul.f32 1.442695, %v1462_v11  ;;  %v1258_v1 = vpop.f32.mrb[49].mxu1  ;;  %v989_v62 = vadd.f32 %v3012_v53, %v3046_v29 }
 0x177   :  { %v2290_v58 = vpop.eup %2289  ;;  %1770 = vst [vmem:[%s3386_s3 + $0x8] sm:$0xff] %v2288_v57  ;;  %2309 = vpow2.f32 %v1543_v23  ;;  %v1259_v6 = vadd.f32 %v1258_v1, %v970_v3  ;;  %v3082_v9 = vpop.f32.mrb[50].mxu0  ;;  %v1467_v17 = vsub.f32 0.0, %v1267_v61 }
 0x178   :  { %v2041_v7 = vpop.f32.mrb[50].mxu1  ;;  %v2292_v13 = vpop.eup %2291  ;;  %v1651_v14 = vadd.f32 1.0, %v2290_v58  ;;  %2311 = vpow2.f32 %v1539_v34 }
 0x179   :  { %v1006_v43 = vpop.f32.mrb[51].mxu0  ;;  %v1261_v18 = vpop.f32.mrb[51].mxu1  ;;  %v1649_v10 = vadd.f32 1.0, %v2292_v13  ;;  %v1465_v21 = vsub.f32 0.0, %v1259_v6  ;;  %v1270_v22 = vadd.f32 %v2041_v7, %v981_v5  ;;  %v1549_v49 = vmul.f32 1.442695, %v1467_v17 }
 0x17a   :  { %v2294_v35 = vpop.eup %2293  ;;  %v1262_v25 = vadd.f32 %v1261_v18, %v973_v2  ;;  %2313 = vrcp.f32 %v1651_v14 }
 0x17b   :  { %v2296_v26 = vpop.eup %2295  ;;  %v1652_v27 = vadd.f32 1.0, %v2294_v35  ;;  %2315 = vrcp.f32 %v1649_v10  ;;  %v1545_v30 = vmul.f32 1.442695, %v1465_v21  ;;  %v1468_v55 = vsub.f32 0.0, %v1270_v22 }
 0x17c   :  { %v2298_v63 = vpop.eup %2297  ;;  %v1650_v19 = vadd.f32 1.0, %v2296_v26  ;;  %v1466_v37 = vsub.f32 0.0, %v1262_v25  ;;  %v1009_v42 = vpop.f32.mrb[52].mxu0 }
 0x17d   :  { %v2300_v47 = vpop.eup %2299  ;;  %1775 = vst [vmem:[%s3386_s3 + $0x30] sm:$0xff] %v2298_v63  ;;  %2317 = vrcp.f32 %v1652_v27  ;;  %v1551_v31 = vmul.f32 1.442695, %v1468_v55  ;;  %v2044_v45 = vpop.f32.mrb[52].mxu1  ;;  %v1010_v22 = vadd.f32 %v3012_v53, %v1009_v42  ;;  %v1002_v27 = vadd.f32 %v3012_v53, %v3070_v50 }
 0x17e   :  { %v2302_v38 = vpop.eup %2301  ;;  %1773 = vst [vmem:[%s3386_s3 + $0x20] sm:$0xff] %v2300_v47  ;;  %2319 = vrcp.f32 %v1650_v19  ;;  %v1547_v15 = vmul.f32 1.442695, %v1466_v37  ;;  %v1283_v11 = vadd.f32 %v2044_v45, %v994_v33  ;;  %v1011_v46 = vpop.f32.mrb[53].mxu0  ;;  %v1005_v50 = vadd.f32 %v3012_v53, %v3082_v9 }
 0x17f   :  { %v2304_v39 = vpop.eup %2303  ;;  %1776 = vst [vmem:[%s3386_s3 + $0x38] sm:$0xff] %v2302_v38  ;;  %2321 = vpow2.f32 %v1549_v49  ;;  %v1274_v3 = vpop.f32.mrb[53].mxu1 }
 0x180   :  { %v2306_v23 = vpop.eup %2305  ;;  %1774 = vst [vmem:[%s3386_s3 + $0x28] sm:$0xff] %v2304_v39  ;;  %2323 = vpow2.f32 %v1545_v30  ;;  %v1275_v54 = vadd.f32 %v1274_v3, %v986_v41  ;;  %v1012_v57 = vpop.f32.mrb[54].mxu0  ;;  %v1471_v58 = vsub.f32 0.0, %v1283_v11 }
 0x181   :  { %v2045_v34 = vpop.f32.mrb[54].mxu1  ;;  %v2308_v61 = vpop.eup %2307  ;;  %v1655_v1 = vadd.f32 1.0, %v2306_v23  ;;  %2325 = vpow2.f32 %v1551_v31  ;;  %v1013_v55 = vadd.f32 %v3012_v53, %v1012_v57 }
 0x182   :  { %v1014_v2 = vpop.f32.mrb[55].mxu0  ;;  %v1277_v5 = vpop.f32.mrb[55].mxu1  ;;  %v1653_v7 = vadd.f32 1.0, %v2308_v61  ;;  %2327 = vpow2.f32 %v1547_v15  ;;  %v1469_v13 = vsub.f32 0.0, %v1275_v54  ;;  %v1286_v14 = vadd.f32 %v2045_v34, %v997_v59 }
 0x183   :  { %v2310_v6 = vpop.eup %2309  ;;  %2329 = vrcp.f32 %v1655_v1  ;;  %v1557_v43 = vmul.f32 1.442695, %v1471_v58  ;;  %v1278_v18 = vadd.f32 %v1277_v5, %v989_v62 }
 0x184   :  { %v2312_v17 = vpop.eup %2311  ;;  %v1656_v51 = vadd.f32 1.0, %v2310_v6  ;;  %2331 = vrcp.f32 %v1653_v7  ;;  %v1553_v10 = vmul.f32 1.442695, %v1469_v13  ;;  %v1472_v21 = vsub.f32 0.0, %v1286_v14  ;;  %v1017_v63 = vpop.f32.mrb[56].mxu0 }
 0x185   :  { %v1654_v35 = vadd.f32 1.0, %v2312_v17  ;;  %v2314_v29 = vpop.eup %2313  ;;  %v1470_v25 = vsub.f32 0.0, %v1278_v18  ;;  %v2048_v19 = vpop.f32.mrb[56].mxu1  ;;  %v1018_v14 = vadd.f32 %v3012_v53, %v1017_v63 }
 0x186   :  { %2333 = vrcp.f32 %v1656_v51  ;;  %v2316_v26 = vpop.eup %2315  ;;  %1779 = vst [vmem:[%s3386_s3 + $0x50] sm:$0xff] %v2314_v29  ;;  %v1559_v49 = vmul.f32 1.442695, %v1472_v21  ;;  %v1299_v33 = vadd.f32 %v2048_v19, %v1010_v22  ;;  %v1019_v37 = vpop.f32.mrb[57].mxu0 }
 0x187   :  { %2335 = vrcp.f32 %v1654_v35  ;;  %v2318_v30 = vpop.eup %2317  ;;  %1777 = vst [vmem:[%s3386_s3 + $0x40] sm:$0xff] %v2316_v26  ;;  %v1555_v47 = vmul.f32 1.442695, %v1470_v25  ;;  %v1290_v38 = vpop.f32.mrb[57].mxu1 }
 0x188   :  { %2337 = vpow2.f32 %v1557_v43  ;;  %v2320_v41 = vpop.eup %2319  ;;  %1780 = vst [vmem:[%s3386_s3 + $0x58] sm:$0xff] %v2318_v30  ;;  %v1291_v31 = vadd.f32 %v1290_v38, %v1002_v27  ;;  %v1020_v42 = vpop.f32.mrb[58].mxu0  ;;  %v1475_v15 = vsub.f32 0.0, %v1299_v33 }
 0x189   :  { %2339 = vpow2.f32 %v1553_v10  ;;  %v2049_v45 = vpop.f32.mrb[58].mxu1  ;;  %v2322_v39 = vpop.eup %2321  ;;  %1778 = vst [vmem:[%s3386_s3 + $0x48] sm:$0xff] %v2320_v41  ;;  %v1021_v25 = vadd.f32 %v3012_v53, %v1020_v42 }
 0x18a   :  { %2341 = vpow2.f32 %v1559_v49  ;;  %v1302_v11 = vadd.f32 %v2049_v45, %v1013_v55  ;;  %v1022_v46 = vpop.f32.mrb[59].mxu0  ;;  %v1293_v3 = vpop.f32.mrb[59].mxu1  ;;  %v1659_v59 = vadd.f32 1.0, %v2322_v39  ;;  %v1473_v54 = vsub.f32 0.0, %v1291_v31 }
 0x18b   :  { %v2324_v23 = vpop.eup %2323  ;;  %2343 = vpow2.f32 %v1555_v47  ;;  %v1294_v57 = vadd.f32 %v1293_v3, %v1005_v50  ;;  %v1565_v58 = vmul.f32 1.442695, %v1475_v15 }
 0x18c   :  { %v2326_v9 = vpop.eup %2325  ;;  %v1657_v34 = vadd.f32 1.0, %v2324_v23  ;;  %v1476_v61 = vsub.f32 0.0, %v1302_v11  ;;  %2345 = vrcp.f32 %v1659_v59  ;;  %v1561_v7 = vmul.f32 1.442695, %v1473_v54  ;;  %v1025_v51 = vpop.f32.mrb[60].mxu0 }
 0x18d   :  { %v2328_v62 = vpop.eup %2327  ;;  %v1660_v1 = vadd.f32 1.0, %v2326_v9  ;;  %v1474_v2 = vsub.f32 0.0, %v1294_v57  ;;  %v2052_v43 = vpop.f32.mrb[60].mxu1  ;;  %v1026_v10 = vadd.f32 %v3012_v53, %v1025_v51 }
 0x18e   :  { %v2330_v5 = vpop.eup %2329  ;;  %2347 = vrcp.f32 %v1657_v34  ;;  %v1658_v6 = vadd.f32 1.0, %v2328_v62  ;;  %v1567_v17 = vmul.f32 1.442695, %v1476_v61  ;;  %v1027_v21 = vpop.f32.mrb[61].mxu0 }
 0x18f   :  { %v2332_v13 = vpop.eup %2331  ;;  %1783 = vst [vmem:[%s3386_s3 + $0x70] sm:$0xff] %v2330_v5  ;;  %2349 = vrcp.f32 %v1660_v1  ;;  %v1563_v35 = vmul.f32 1.442695, %v1474_v2  ;;  %v1306_v29 = vpop.f32.mrb[61].mxu1  ;;  %v1315_v19 = vadd.f32 %v2052_v43, %v1026_v10 }
 0x190   :  { %v2334_v18 = vpop.eup %2333  ;;  %1781 = vst [vmem:[%s3386_s3 + $0x60] sm:$0xff] %v2332_v13  ;;  %2351 = vrcp.f32 %v1658_v6  ;;  %v1307_v26 = vadd.f32 %v1306_v29, %v1018_v14  ;;  %v1028_v27 = vpop.f32.mrb[62].mxu0 }
 0x191   :  { %v2336_v22 = vpop.eup %2335  ;;  %1784 = vst [vmem:[%s3386_s3 + $0x78] sm:$0xff] %v2334_v18  ;;  %2353 = vpow2.f32 %v1565_v58  ;;  %v2053_v49 = vpop.f32.mrb[62].mxu1  ;;  %v1029_v30 = vadd.f32 %v3012_v53, %v1028_v27  ;;  %v1479_v42 = vsub.f32 0.0, %v1315_v19 }
 0x192   :  { %v2338_v63 = vpop.eup %2337  ;;  %1782 = vst [vmem:[%s3386_s3 + $0x68] sm:$0xff] %v2336_v22  ;;  %2355 = vpow2.f32 %v1561_v7  ;;  %v1030_v55 = vpop.f32.mrb[63].mxu0  ;;  %v1477_v38 = vsub.f32 0.0, %v1307_v26 }
 0x193   :  { %v1309_v47 = vpop.f32.mrb[63].mxu1  ;;  %v2340_v33 = vpop.eup %2339  ;;  %v1663_v37 = vadd.f32 1.0, %v2338_v63  ;;  %2357 = vpow2.f32 %v1567_v17  ;;  %v1318_v45 = vadd.f32 %v2053_v49, %v1029_v30  ;;  %v1573_v23 = vmul.f32 1.442695, %v1479_v42 }
 0x194   :  { %v1310_v41 = vadd.f32 %v1309_v47, %v1021_v25  ;;  %v2342_v50 = vpop.eup %2341  ;;  %v1661_v31 = vadd.f32 1.0, %v2340_v33  ;;  %2359 = vpow2.f32 %v1563_v35  ;;  %v1569_v11 = vmul.f32 1.442695, %v1477_v38  ;;  %v1033_v57 = vpop.f32.mrb[64].mxu0 }
 0x195   :  { %v2344_v39 = vpop.eup %2343  ;;  %2361 = vrcp.f32 %v1663_v37  ;;  %v1664_v15 = vadd.f32 1.0, %v2342_v50  ;;  %v1480_v59 = vsub.f32 0.0, %v1318_v45  ;;  %v2056_v9 = vpop.f32.mrb[64].mxu1  ;;  %v1034_v1 = vadd.f32 %v3012_v53, %v1033_v57 }
 0x196   :  { %v1478_v46 = vsub.f32 0.0, %v1310_v41  ;;  %2363 = vrcp.f32 %v1661_v31  ;;  %v1662_v3 = vadd.f32 1.0, %v2344_v39  ;;  %v2346_v54 = vpop.eup %2345  ;;  %v1035_v58 = vpop.f32.mrb[65].mxu0 }
 0x197   :  { %2365 = vrcp.f32 %v1664_v15  ;;  %1787 = vst [vmem:[%s3386_s3 + $0x90] sm:$0xff] %v2346_v54  ;;  %v1575_v61 = vmul.f32 1.442695, %v1480_v59  ;;  %v1322_v2 = vpop.f32.mrb[65].mxu1  ;;  %v1036_v6 = vpop.f32.mrb[66].mxu0 }
 0x198   :  { %v2348_v34 = vpop.eup %2347  ;;  %2367 = vrcp.f32 %v1662_v3  ;;  %v1571_v62 = vmul.f32 1.442695, %v1478_v46  ;;  %v2057_v7 = vpop.f32.mrb[66].mxu1  ;;  %v1323_v14 = vadd.f32 %v1322_v2, %v1034_v1  ;;  %v1037_v17 = vadd.f32 %v3012_v53, %v1036_v6 }
 0x199   :  { %v2350_v5 = vpop.eup %2349  ;;  %1785 = vst [vmem:[%s3386_s3 + $0x80] sm:$0xff] %v2348_v34  ;;  %2369 = vpow2.f32 %v1573_v23  ;;  %v1038_v51 = vpop.f32.mrb[67].mxu0 }
 0x19a   :  { %v2352_v13 = vpop.eup %2351  ;;  %1788 = vst [vmem:[%s3386_s3 + $0x98] sm:$0xff] %v2350_v5  ;;  %2371 = vpow2.f32 %v1569_v11  ;;  %v1325_v43 = vpop.f32.mrb[67].mxu1  ;;  %v1481_v21 = vsub.f32 0.0, %v1323_v14 }
 0x19b   :  { %v2354_v18 = vpop.eup %2353  ;;  %1786 = vst [vmem:[%s3386_s3 + $0x88] sm:$0xff] %v2352_v13  ;;  %2373 = vpow2.f32 %v1575_v61  ;;  %v1326_v29 = vadd.f32 %v1325_v43, %v1037_v17 }
 0x19c   :  { %v2356_v35 = vpop.eup %2355  ;;  %v1667_v10 = vadd.f32 1.0, %v2354_v18  ;;  %2375 = vpow2.f32 %v1571_v62  ;;  %v1577_v49 = vmul.f32 1.442695, %v1481_v21  ;;  %v1041_v55 = vpop.f32.mrb[68].mxu0 }
 0x19d   :  { %v2358_v22 = vpop.eup %2357  ;;  %v1665_v25 = vadd.f32 1.0, %v2356_v35  ;;  %v1482_v63 = vsub.f32 0.0, %v1326_v29  ;;  %v3152_v47 = vpop.f32.mrb[68].mxu1  ;;  %v1042_v38 = vadd.f32 %v3012_v53, %v1041_v55 }
 0x19e   :  { %v2360_v26 = vpop.eup %2359  ;;  %2377 = vrcp.f32 %v1667_v10  ;;  %v1668_v27 = vadd.f32 1.0, %v2358_v22  ;;  %v1043_v41 = vpop.f32.mrb[69].mxu0 }
 0x19f   :  { %v2362_v19 = vpop.eup %2361  ;;  %2379 = vrcp.f32 %v1665_v25  ;;  %v1666_v30 = vadd.f32 1.0, %v2360_v26  ;;  %v1579_v37 = vmul.f32 1.442695, %v1482_v63  ;;  %v1338_v50 = vpop.f32.mrb[69].mxu1  ;;  %v1331_v15 = vadd.f32 %v2056_v9, %v1042_v38 }
 0x1a0   :  { %v2364_v33 = vpop.eup %2363  ;;  %1791 = vst [vmem:[%s3386_s3 + $0xb0] sm:$0xff] %v2362_v19  ;;  %2381 = vrcp.f32 %v1668_v27  ;;  %v1044_v42 = vpop.f32.mrb[70].mxu0 }
 0x1a1   :  { %v2366_v31 = vpop.eup %2365  ;;  %1789 = vst [vmem:[%s3386_s3 + $0xa0] sm:$0xff] %v2364_v33  ;;  %2383 = vrcp.f32 %v1666_v30  ;;  %v3161_v45 = vpop.f32.mrb[70].mxu1  ;;  %v1045_v11 = vadd.f32 %v3012_v53, %v1044_v42  ;;  %v1483_v57 = vsub.f32 0.0, %v1331_v15 }
 0x1a2   :  { %v2368_v39 = vpop.eup %2367  ;;  %1792 = vst [vmem:[%s3386_s3 + $0xb8] sm:$0xff] %v2366_v31  ;;  %2385 = vpow2.f32 %v1577_v49  ;;  %v1046_v46 = vpop.f32.mrb[71].mxu0 }
 0x1a3   :  { %v1341_v3 = vpop.f32.mrb[71].mxu1  ;;  %v2370_v23 = vpop.eup %2369  ;;  %1790 = vst [vmem:[%s3386_s3 + $0xa8] sm:$0xff] %v2368_v39  ;;  %2387 = vpow2.f32 %v1579_v37  ;;  %v1334_v34 = vadd.f32 %v2057_v7, %v1045_v11  ;;  %v1581_v9 = vmul.f32 1.442695, %v1483_v57 }
 0x1a4   :  { %v2372_v59 = vpop.eup %2371  ;;  %v1671_v54 = vadd.f32 1.0, %v2370_v23  ;;  %v1049_v6 = vpop.f32.mrb[72].mxu0 }
 0x1a5   :  { %v2374_v61 = vpop.eup %2373  ;;  %v1669_v62 = vadd.f32 1.0, %v2372_v59  ;;  %v1484_v2 = vsub.f32 0.0, %v1334_v34  ;;  %v3170_v13 = vpop.f32.mrb[72].mxu1  ;;  %v1050_v51 = vadd.f32 %v3012_v53, %v1049_v6 }
 0x1a6   :  { %v2376_v1 = vpop.eup %2375  ;;  %2389 = vrcp.f32 %v1671_v54  ;;  %v1672_v58 = vadd.f32 1.0, %v2374_v61  ;;  %v1051_v43 = vpop.f32.mrb[73].mxu0 }
 0x1a7   :  { %2391 = vrcp.f32 %v1669_v62  ;;  %v1670_v5 = vadd.f32 1.0, %v2376_v1  ;;  %v1583_v17 = vmul.f32 1.442695, %v1484_v2  ;;  %v3173_v18 = vpop.f32.mrb[73].mxu1  ;;  %v1052_v35 = vpop.f32.mrb[74].mxu0  ;;  %v1339_v29 = vadd.f32 %v1338_v50, %v1050_v51 }
 0x1a8   :  { %v2378_v14 = vpop.eup %2377  ;;  %2393 = vrcp.f32 %v1672_v58  ;;  %v3178_v10 = vpop.f32.mrb[74].mxu1  ;;  %v1053_v22 = vadd.f32 %v3012_v53, %v1052_v35  ;;  %v1098_v51 = vadd.f32 %v3012_v53, %v2951_v52 }
 0x1a9   :  { %v2380_v7 = vpop.eup %2379  ;;  %1795 = vst [vmem:[%s3386_s3 + $0xd0] sm:$0xff] %v2378_v14  ;;  %2395 = vrcp.f32 %v1670_v5  ;;  %v1054_v25 = vpop.f32.mrb[75].mxu0  ;;  %v1485_v63 = vsub.f32 0.0, %v1339_v29  ;;  %v1106_v5 = vadd.f32 %v3012_v53, %v2957_v60  ;;  %v1101_v60 = vadd.f32 %v3012_v53, %v2955_v56 }
 0x1aa   :  { %v2382_v21 = vpop.eup %2381  ;;  %1793 = vst [vmem:[%s3386_s3 + $0xc0] sm:$0xff] %v2380_v7  ;;  %2397 = vpow2.f32 %v1581_v9  ;;  %v3184_v26 = vpop.f32.mrb[75].mxu1  ;;  %v1342_v19 = vadd.f32 %v1341_v3, %v1053_v22 }
 0x1ab   :  { %v2384_v27 = vpop.eup %2383  ;;  %1796 = vst [vmem:[%s3386_s3 + $0xd8] sm:$0xff] %v2382_v21  ;;  %2399 = vpow2.f32 %v1583_v17  ;;  %v1585_v37 = vmul.f32 1.442695, %v1485_v63 }
 0x1ac   :  { %v2386_v49 = vpop.eup %2385  ;;  %1794 = vst [vmem:[%s3386_s3 + $0xc8] sm:$0xff] %v2384_v27  ;;  %v1486_v38 = vsub.f32 0.0, %v1342_v19  ;;  %v1057_v41 = vpop.f32.mrb[76].mxu0  ;;  %v1109_v27 = vadd.f32 %v3012_v53, %v2959_v0 }
 0x1ad   :  { %v2388_v30 = vpop.eup %2387  ;;  %v1673_v55 = vadd.f32 1.0, %v2386_v49  ;;  %v3192_v50 = vpop.f32.mrb[76].mxu1  ;;  %v1058_v39 = vadd.f32 %v3012_v53, %v1057_v41 }
 0x1ae   :  { %v1674_v33 = vadd.f32 1.0, %v2388_v30  ;;  %v1587_v42 = vmul.f32 1.442695, %v1486_v38  ;;  %v1059_v15 = vpop.f32.mrb[77].mxu0  ;;  %v3195_v11 = vpop.f32.mrb[77].mxu1 }
 0x1af   :  { %2401 = vrcp.f32 %v1673_v55  ;;  %v1060_v3 = vpop.f32.mrb[78].mxu0  ;;  %v3200_v23 = vpop.f32.mrb[78].mxu1  ;;  %v1347_v54 = vadd.f32 %v3152_v47, %v1058_v39  ;;  %v1122_v39 = vadd.f32 %v3012_v53, %v2971_v12 }
 0x1b0   :  { %v2390_v31 = vpop.eup %2389  ;;  %2403 = vrcp.f32 %v1674_v33  ;;  %v1061_v57 = vadd.f32 %v3012_v53, %v1060_v3  ;;  %v1062_v34 = vpop.f32.mrb[79].mxu0 }
 0x1b1   :  { %v2392_v46 = vpop.eup %2391  ;;  %1799 = vst [vmem:[%s3386_s3 + $0xf0] sm:$0xff] %v2390_v31  ;;  %2405 = vpow2.f32 %v1585_v37  ;;  %v3207_v61 = vpop.f32.mrb[79].mxu1  ;;  %v1487_v58 = vsub.f32 0.0, %v1347_v54 }
 0x1b2   :  { %v2394_v59 = vpop.eup %2393  ;;  %1797 = vst [vmem:[%s3386_s3 + $0xe0] sm:$0xff] %v2392_v46  ;;  %2407 = vpow2.f32 %v1587_v42  ;;  %v1350_v9 = vadd.f32 %v3161_v45, %v1061_v57 }
 0x1b3   :  { %v2396_v62 = vpop.eup %2395  ;;  %1800 = vst [vmem:[%s3386_s3 + $0xf8] sm:$0xff] %v2394_v59  ;;  %v1589_v14 = vmul.f32 1.442695, %v1487_v58  ;;  %v1114_v58 = vadd.f32 %v3012_v53, %v2963_v4 }
 0x1b4   :  { %v2398_v1 = vpop.eup %2397  ;;  %1798 = vst [vmem:[%s3386_s3 + $0xe8] sm:$0xff] %v2396_v62  ;;  %v1488_v17 = vsub.f32 0.0, %v1350_v9  ;;  %v1065_v43 = vpop.f32.mrb[80].mxu0  ;;  %v1117_v9 = vadd.f32 %v3012_v53, %v2967_v8 }
 0x1b5   :  { %v2400_v2 = vpop.eup %2399  ;;  %v1675_v47 = vadd.f32 1.0, %v2398_v1  ;;  %v2072_v7 = vpop.f32.mrb[80].mxu1  ;;  %v1066_v21 = vadd.f32 %v3012_v53, %v1065_v43 }
 0x1b6   :  { %v1676_v6 = vadd.f32 1.0, %v2400_v2  ;;  %v1591_v35 = vmul.f32 1.442695, %v1488_v17  ;;  %v1395_v29 = vadd.f32 %v2072_v7, %v1106_v5  ;;  %v1067_v45 = vpop.f32.mrb[81].mxu0  ;;  %v1386_v22 = vpop.f32.mrb[81].mxu1 }
 0x1b7   :  { %2409 = vrcp.f32 %v1675_v47  ;;  %v1387_v49 = vadd.f32 %v1386_v22, %v1098_v51  ;;  %v1068_v52 = vpop.f32.mrb[82].mxu0  ;;  %v2073_v63 = vpop.f32.mrb[82].mxu1  ;;  %v1355_v30 = vadd.f32 %v3173_v18, %v1066_v21  ;;  %v3243_v5 = vld [vmem:[%s3385_s2] ss:$0 sm:$0xff] }
 0x1b8   :  { %2411 = vrcp.f32 %v1676_v6  ;;  %v1499_v55 = vsub.f32 0.0, %v1395_v29  ;;  %v1069_v33 = vadd.f32 %v3012_v53, %v1068_v52  ;;  %v1070_v37 = vpop.f32.mrb[83].mxu0  ;;  %v1389_v56 = vpop.f32.mrb[83].mxu1  ;;  %v1398_v41 = vadd.f32 %v2073_v63, %v1109_v27 }
 0x1b9   :  { %v2402_v25 = vpop.eup %2401  ;;  %2413 = vpow2.f32 %v1589_v14  ;;  %v1497_v0 = vsub.f32 0.0, %v1387_v49  ;;  %v1390_v31 = vadd.f32 %v1389_v56, %v1101_v60  ;;  %v1489_v46 = vsub.f32 0.0, %v1355_v30 }
 0x1ba   :  { %v2404_v19 = vpop.eup %2403  ;;  %1801 = vst [vmem:[%s3386_s3 + $0x100] sm:$0xff] %v2402_v25  ;;  %2415 = vpow2.f32 %v1591_v35  ;;  %v1358_v18 = vadd.f32 %v3184_v26, %v1069_v33  ;;  %v1613_v59 = vmul.f32 1.442695, %v1499_v55  ;;  %v1500_v54 = vsub.f32 0.0, %v1398_v41 }
 0x1bb   :  { %v2406_v38 = vpop.eup %2405  ;;  %1802 = vst [vmem:[%s3386_s3 + $0x108] sm:$0xff] %v2404_v19  ;;  %v1498_v57 = vsub.f32 0.0, %v1390_v31  ;;  %v1593_v34 = vmul.f32 1.442695, %v1489_v46  ;;  %v1609_v62 = vmul.f32 1.442695, %v1497_v0  ;;  %v1125_v8 = vadd.f32 %v3243_v5, %v2975_v16 }
 0x1bc   :  { %v2408_v42 = vpop.eup %2407  ;;  %v1677_v15 = vadd.f32 1.0, %v2406_v38  ;;  %v1490_v1 = vsub.f32 0.0, %v1358_v18  ;;  %v1615_v12 = vmul.f32 1.442695, %v1500_v54  ;;  %v1073_v2 = vpop.f32.mrb[84].mxu0  ;;  %v1130_v19 = vadd.f32 %v3243_v5, %v2979_v20 }
 0x1bd   :  { %v1678_v3 = vadd.f32 1.0, %v2408_v42  ;;  %v2076_v47 = vpop.f32.mrb[84].mxu1  ;;  %v1074_v6 = vadd.f32 %v3243_v5, %v1073_v2  ;;  %v1075_v17 = vpop.f32.mrb[85].mxu0  ;;  %v1611_v53 = vmul.f32 1.442695, %v1498_v57  ;;  %v1138_v41 = vadd.f32 %v3243_v5, %v2987_v28 }
 0x1be   :  { %2417 = vrcp.f32 %v1677_v15  ;;  %v1595_v26 = vmul.f32 1.442695, %v1490_v1  ;;  %v1411_v14 = vadd.f32 %v2076_v47, %v1122_v39  ;;  %v1402_v51 = vpop.f32.mrb[85].mxu1  ;;  %v1076_v7 = vpop.f32.mrb[86].mxu0  ;;  %v1141_v31 = vadd.f32 %v3243_v5, %v2991_v32 }
 0x1bf   :  { %2419 = vrcp.f32 %v1678_v3  ;;  %v1403_v43 = vadd.f32 %v1402_v51, %v1114_v58  ;;  %v2077_v35 = vpop.f32.mrb[86].mxu1  ;;  %v1363_v29 = vadd.f32 %v3170_v13, %v1074_v6  ;;  %v1077_v22 = vadd.f32 %v3243_v5, %v1076_v7  ;;  %v1078_v25 = vpop.f32.mrb[87].mxu0 }
 0x1c0   :  { %2421 = vpow2.f32 %v1593_v34  ;;  %v1503_v45 = vsub.f32 0.0, %v1411_v14  ;;  %v1405_v60 = vpop.f32.mrb[87].mxu1  ;;  %v1414_v49 = vadd.f32 %v2077_v35, %v1125_v8  ;;  %v1154_v35 = vadd.f32 %v3243_v5, %v3003_v44 }
 0x1c1   :  { %v2410_v4 = vpop.eup %2409  ;;  %2423 = vpow2.f32 %v1613_v59  ;;  %v1501_v16 = vsub.f32 0.0, %v1403_v43  ;;  %v1406_v52 = vadd.f32 %v1405_v60, %v1117_v9  ;;  %v1491_v13 = vsub.f32 0.0, %v1363_v29 }
 0x1c2   :  { %v2412_v21 = vpop.eup %2411  ;;  %1803 = vst [vmem:[%s3386_s3 + $0x110] sm:$0xff] %v2410_v4  ;;  %2425 = vpow2.f32 %v1609_v62  ;;  %v1621_v33 = vmul.f32 1.442695, %v1503_v45  ;;  %v1366_v37 = vadd.f32 %v3178_v10, %v1077_v22  ;;  %v1504_v0 = vsub.f32 0.0, %v1414_v49 }
 0x1c3   :  { %v2414_v27 = vpop.eup %2413  ;;  %1804 = vst [vmem:[%s3386_s3 + $0x118] sm:$0xff] %v2412_v21  ;;  %2427 = vpow2.f32 %v1595_v26  ;;  %v1597_v56 = vmul.f32 1.442695, %v1491_v13  ;;  %v1617_v38 = vmul.f32 1.442695, %v1501_v16  ;;  %v1502_v18 = vsub.f32 0.0, %v1406_v52 }
 0x1c4   :  { %v2416_v63 = vpop.eup %2415  ;;  %v1679_v30 = vadd.f32 1.0, %v2414_v27  ;;  %2429 = vpow2.f32 %v1615_v12  ;;  %v1492_v20 = vsub.f32 0.0, %v1366_v37  ;;  %v1081_v42 = vpop.f32.mrb[88].mxu0  ;;  %v1623_v46 = vmul.f32 1.442695, %v1504_v0 }
 0x1c5   :  { %v1680_v55 = vadd.f32 1.0, %v2416_v63  ;;  %2431 = vpow2.f32 %v1611_v53  ;;  %v2080_v39 = vpop.f32.mrb[88].mxu1  ;;  %v1082_v10 = vadd.f32 %v3243_v5, %v1081_v42  ;;  %v1083_v3 = vpop.f32.mrb[89].mxu0  ;;  %v1146_v53 = vadd.f32 %v3243_v5, %v2995_v36 }
 0x1c6   :  { %2433 = vrcp.f32 %v1679_v30  ;;  %v1418_v59 = vpop.f32.mrb[89].mxu1  ;;  %v1599_v28 = vmul.f32 1.442695, %v1492_v20  ;;  %v3267_v32 = vadd.f32 %v2080_v39, %v1138_v41  ;;  %v1084_v34 = vpop.f32.mrb[90].mxu0  ;;  %v1619_v29 = vmul.f32 1.442695, %v1502_v18 }
 0x1c7   :  { %2435 = vrcp.f32 %v1680_v55  ;;  %v3269_v57 = vadd.f32 %v1418_v59, %v1130_v19  ;;  %v2081_v62 = vpop.f32.mrb[90].mxu1  ;;  %v1371_v58 = vadd.f32 %v3195_v11, %v1082_v10  ;;  %v1085_v9 = vadd.f32 %v3243_v5, %v1084_v34  ;;  %v1086_v2 = vpop.f32.mrb[91].mxu0 }
 0x1c8   :  { %v2418_v15 = vpop.eup %2417  ;;  %2437 = vpow2.f32 %v1597_v56  ;;  %v3276_v12 = vadd.f32 %v2081_v62, %v1141_v31  ;;  %v1421_v47 = vpop.f32.mrb[91].mxu1  ;;  %v1133_v11 = vadd.f32 %v3243_v5, %v2983_v24  ;;  %v1507_v22 = vsub.f32 0.0, %v3267_v32 }
 0x1c9   :  { %v2420_v54 = vpop.eup %2419  ;;  %1805 = vst [vmem:[%s3386_s3 + $0x120] sm:$0xff] %v2418_v15  ;;  %2439 = vpow2.f32 %v1621_v33  ;;  %v1493_v51 = vsub.f32 0.0, %v1371_v58  ;;  %v3279_v4 = vadd.f32 %v3207_v61, %v1085_v9  ;;  %v1505_v19 = vsub.f32 0.0, %v3269_v57 }
 0x1ca   :  { %v2422_v1 = vpop.eup %2421  ;;  %1806 = vst [vmem:[%s3386_s3 + $0x128] sm:$0xff] %v2420_v54  ;;  %2441 = vpow2.f32 %v1617_v38  ;;  %v1422_v25 = vadd.f32 %v1421_v47, %v1133_v11  ;;  %v1149_v20 = vadd.f32 %v3243_v5, %v2999_v40  ;;  %v1157_v42 = vadd.f32 %v3243_v5, %v3007_v48 }
 0x1cb   :  { %v2424_v26 = vpop.eup %2423  ;;  %v1681_v6 = vadd.f32 1.0, %v2422_v1  ;;  %2443 = vpow2.f32 %v1599_v28  ;;  %v1601_v16 = vmul.f32 1.442695, %v1493_v51  ;;  %v1629_v18 = vmul.f32 1.442695, %v1507_v22 }
 0x1cc   :  { %v2426_v14 = vpop.eup %2425  ;;  %v1691_v17 = vadd.f32 1.0, %v2424_v26  ;;  %2445 = vpow2.f32 %v1623_v46  ;;  %v1089_v60 = vpop.f32.mrb[92].mxu0  ;;  %v1508_v59 = vsub.f32 0.0, %v3276_v12  ;;  %v1625_v32 = vmul.f32 1.442695, %v1505_v19 }
 0x1cd   :  { %v2428_v8 = vpop.eup %2427  ;;  %2447 = vrcp.f32 %v1681_v6  ;;  %v1689_v43 = vadd.f32 1.0, %v2426_v14  ;;  %v2084_v24 = vpop.f32.mrb[92].mxu1  ;;  %v1090_v49 = vadd.f32 %v3243_v5, %v1089_v60  ;;  %v1506_v48 = vsub.f32 0.0, %v1422_v25 }
 0x1ce   :  { %v2430_v7 = vpop.eup %2429  ;;  %2449 = vrcp.f32 %v1691_v17  ;;  %v1682_v21 = vadd.f32 1.0, %v2428_v8  ;;  %v1091_v52 = vpop.f32.mrb[93].mxu0  ;;  %v3293_v30 = vadd.f32 %v2084_v24, %v1154_v35 }
 0x1cf   :  { %v2432_v45 = vpop.eup %2431  ;;  %2451 = vrcp.f32 %v1689_v43  ;;  %v1692_v61 = vadd.f32 1.0, %v2430_v7  ;;  %v1434_v63 = vpop.f32.mrb[93].mxu1  ;;  %v1379_v37 = vadd.f32 %v3192_v50, %v1090_v49  ;;  %v1494_v50 = vsub.f32 0.0, %v3279_v4 }
 0x1d0   :  { %v2434_v27 = vpop.eup %2433  ;;  %2453 = vrcp.f32 %v1682_v21  ;;  %v1690_v36 = vadd.f32 1.0, %v2432_v45  ;;  %v1092_v13 = vpop.f32.mrb[94].mxu0  ;;  %v3299_v56 = vadd.f32 %v1434_v63, %v1146_v53  ;;  %v1627_v47 = vmul.f32 1.442695, %v1506_v48 }
 0x1d1   :  { %v2436_v44 = vpop.eup %2435  ;;  %1807 = vst [vmem:[%s3386_s3 + $0x130] sm:$0xff] %v2434_v27  ;;  %2455 = vrcp.f32 %v1692_v61  ;;  %v2085_v55 = vpop.f32.mrb[94].mxu1  ;;  %v1093_v38 = vadd.f32 %v3243_v5, %v1092_v13  ;;  %v1495_v34 = vsub.f32 0.0, %v1379_v37  ;;  %v1603_v58 = vmul.f32 1.442695, %v1494_v50 }
 0x1d2   :  { %v2438_v33 = vpop.eup %2437  ;;  %1808 = vst [vmem:[%s3386_s3 + $0x138] sm:$0xff] %v2436_v44  ;;  %2457 = vrcp.f32 %v1690_v36  ;;  %v1094_v0 = vpop.f32.mrb[95].mxu0  ;;  %v1446_v62 = vadd.f32 %v2085_v55, %v1157_v42  ;;  %v1511_v26 = vsub.f32 0.0, %v3293_v30  ;;  %v1509_v17 = vsub.f32 0.0, %v3299_v56 }
 0x1d3   :  { %v1437_v41 = vpop.f32.mrb[95].mxu1  ;;  %v2440_v31 = vpop.eup %2439  ;;  %v1683_v39 = vadd.f32 1.0, %v2438_v33  ;;  %2459 = vpow2.f32 %v1619_v29  ;;  %v1382_v54 = vadd.f32 %v3200_v23, %v1093_v38  ;;  %v1631_v23 = vmul.f32 1.442695, %v1508_v59 }
 0x1d4   :  { %v2442_v15 = vpop.eup %2441  ;;  %v1695_v46 = vadd.f32 1.0, %v2440_v31  ;;  %2461 = vpow2.f32 %v1601_v16  ;;  %v1438_v9 = vadd.f32 %v1437_v41, %v1149_v20  ;;  %v1605_v14 = vmul.f32 1.442695, %v1495_v34 }
 0x1d5   :  { %v2444_v10 = vpop.eup %2443  ;;  %2463 = vrcp.f32 %v1683_v39  ;;  %v1693_v3 = vadd.f32 1.0, %v2442_v15  ;;  %v1496_v4 = vsub.f32 0.0, %v1382_v54  ;;  %v1512_v11 = vsub.f32 0.0, %v1446_v62 }
 0x1d6   :  { %v2446_v28 = vpop.eup %2445  ;;  %2465 = vrcp.f32 %v1695_v46  ;;  %v1684_v40 = vadd.f32 1.0, %v2444_v10  ;;  %v1637_v7 = vmul.f32 1.442695, %v1511_v26  ;;  %v1510_v35 = vsub.f32 0.0, %v1438_v9 }
 0x1d7   :  { %v2448_v5 = vpop.eup %2447  ;;  %2467 = vrcp.f32 %v1693_v3  ;;  %v1696_v57 = vadd.f32 1.0, %v2446_v28  ;;  %v1633_v45 = vmul.f32 1.442695, %v1509_v17  ;;  %v1607_v22 = vmul.f32 1.442695, %v1496_v4 }
 0x1d8   :  { %v2450_v1 = vpop.eup %2449  ;;  %1809 = vst [vmem:[%s3386_s3 + $0x140] sm:$0xff] %v2448_v5  ;;  %2469 = vrcp.f32 %v1684_v40  ;;  %v1639_v60 = vmul.f32 1.442695, %v1512_v11  ;;  %v1635_v27 = vmul.f32 1.442695, %v1510_v35 }
 0x1d9   :  { %v2452_v12 = vpop.eup %2451  ;;  %1819 = vst [vmem:[%s3386_s3 + $0x190] sm:$0xff] %v2450_v1  ;;  %2471 = vrcp.f32 %v1696_v57 }
 0x1da   :  { %v2454_v2 = vpop.eup %2453  ;;  %1817 = vst [vmem:[%s3386_s3 + $0x180] sm:$0xff] %v2452_v12  ;;  %2473 = vpow2.f32 %v1629_v18 }
 0x1db   :  { %v2456_v6 = vpop.eup %2455  ;;  %1810 = vst [vmem:[%s3386_s3 + $0x148] sm:$0xff] %v2454_v2  ;;  %2475 = vpow2.f32 %v1625_v32 }
 0x1dc   :  { %v2458_v51 = vpop.eup %2457  ;;  %1820 = vst [vmem:[%s3386_s3 + $0x198] sm:$0xff] %v2456_v6  ;;  %2477 = vpow2.f32 %v1603_v58 }
 0x1dd   :  { %v2460_v8 = vpop.eup %2459  ;;  %1818 = vst [vmem:[%s3386_s3 + $0x188] sm:$0xff] %v2458_v51  ;;  %2479 = vpow2.f32 %v1631_v23 }
 0x1de   :  { %v2462_v53 = vpop.eup %2461  ;;  %v1694_v43 = vadd.f32 1.0, %v2460_v8  ;;  %2481 = vpow2.f32 %v1627_v47 }
 0x1df   :  { %v2464_v21 = vpop.eup %2463  ;;  %v1685_v29 = vadd.f32 1.0, %v2462_v53  ;;  %2483 = vpow2.f32 %v1605_v14 }
 0x1e0   :  { %v2466_v61 = vpop.eup %2465  ;;  %1811 = vst [vmem:[%s3386_s3 + $0x150] sm:$0xff] %v2464_v21  ;;  %2485 = vrcp.f32 %v1694_v43 }
 0x1e1   :  { %v2468_v25 = vpop.eup %2467  ;;  %1823 = vst [vmem:[%s3386_s3 + $0x1b0] sm:$0xff] %v2466_v61  ;;  %2487 = vrcp.f32 %v1685_v29 }
 0x1e2   :  { %v2470_v24 = vpop.eup %2469  ;;  %1821 = vst [vmem:[%s3386_s3 + $0x1a0] sm:$0xff] %v2468_v25  ;;  %2489 = vpow2.f32 %v1637_v7 }
 0x1e3   :  { %v2472_v36 = vpop.eup %2471  ;;  %1812 = vst [vmem:[%s3386_s3 + $0x158] sm:$0xff] %v2470_v24  ;;  %2491 = vpow2.f32 %v1633_v45 }
 0x1e4   :  { %v2474_v16 = vpop.eup %2473  ;;  %1824 = vst [vmem:[%s3386_s3 + $0x1b8] sm:$0xff] %v2472_v36  ;;  %2493 = vpow2.f32 %v1607_v22 }
 0x1e5   :  { %v2476_v49 = vpop.eup %2475  ;;  %v1699_v52 = vadd.f32 1.0, %v2474_v16  ;;  %2495 = vpow2.f32 %v1639_v60 }
 0x1e6   :  { %v2478_v63 = vpop.eup %2477  ;;  %v1697_v44 = vadd.f32 1.0, %v2476_v49  ;;  %2497 = vpow2.f32 %v1635_v27 }
 0x1e7   :  { %v2480_v19 = vpop.eup %2479  ;;  %2499 = vrcp.f32 %v1699_v52  ;;  %v1686_v30 = vadd.f32 1.0, %v2478_v63 }
 0x1e8   :  { %v2482_v13 = vpop.eup %2481  ;;  %2501 = vrcp.f32 %v1697_v44  ;;  %v1700_v55 = vadd.f32 1.0, %v2480_v19 }
 0x1e9   :  { %v2484_v33 = vpop.eup %2483  ;;  %2503 = vrcp.f32 %v1686_v30  ;;  %v1698_v37 = vadd.f32 1.0, %v2482_v13 }
 0x1ea   :  { %v2486_v56 = vpop.eup %2485  ;;  %2505 = vrcp.f32 %v1700_v55  ;;  %v1687_v38 = vadd.f32 1.0, %v2484_v33 }
 0x1eb   :  { %v2488_v0 = vpop.eup %2487  ;;  %1822 = vst [vmem:[%s3386_s3 + $0x1a8] sm:$0xff] %v2486_v56  ;;  %2507 = vrcp.f32 %v1698_v37 }
 0x1ec   :  { %v2490_v41 = vpop.eup %2489  ;;  %1813 = vst [vmem:[%s3386_s3 + $0x160] sm:$0xff] %v2488_v0  ;;  %2509 = vrcp.f32 %v1687_v38 }
 0x1ed   :  { %v2492_v31 = vpop.eup %2491  ;;  %v1703_v20 = vadd.f32 1.0, %v2490_v41 }
 0x1ee   :  { %v2494_v42 = vpop.eup %2493  ;;  %v1701_v39 = vadd.f32 1.0, %v2492_v31 }
 0x1ef   :  { %v2496_v15 = vpop.eup %2495  ;;  %2511 = vrcp.f32 %v1703_v20  ;;  %v1688_v46 = vadd.f32 1.0, %v2494_v42 }
 0x1f0   :  { %v2498_v18 = vpop.eup %2497  ;;  %2513 = vrcp.f32 %v1701_v39  ;;  %v1704_v50 = vadd.f32 1.0, %v2496_v15 }
 0x1f1   :  { %v2500_v10 = vpop.eup %2499  ;;  %2515 = vrcp.f32 %v1688_v46  ;;  %v1702_v3 = vadd.f32 1.0, %v2498_v18 }
 0x1f2   :  { %v2502_v59 = vpop.eup %2501  ;;  %1827 = vst [vmem:[%s3386_s3 + $0x1d0] sm:$0xff] %v2500_v10  ;;  %2517 = vrcp.f32 %v1704_v50 }
 0x1f3   :  { %v2504_v54 = vpop.eup %2503  ;;  %1825 = vst [vmem:[%s3386_s3 + $0x1c0] sm:$0xff] %v2502_v59  ;;  %2519 = vrcp.f32 %v1702_v3 }
 0x1f4   :  { %v2506_v28 = vpop.eup %2505  ;;  %1814 = vst [vmem:[%s3386_s3 + $0x168] sm:$0xff] %v2504_v54 }
 0x1f5   :  { %v2508_v40 = vpop.eup %2507  ;;  %1828 = vst [vmem:[%s3386_s3 + $0x1d8] sm:$0xff] %v2506_v28 }
 0x1f6   :  { %v2510_v32 = vpop.eup %2509  ;;  %1826 = vst [vmem:[%s3386_s3 + $0x1c8] sm:$0xff] %v2508_v40 }
 0x1f7   :  { %1815 = vst [vmem:[%s3386_s3 + $0x170] sm:$0xff] %v2510_v32 }
 0x1f9   :  { %v2512_v48 = vpop.eup %2511 }
 0x1fa   :  { %v2514_v5 = vpop.eup %2513  ;;  %1831 = vst [vmem:[%s3386_s3 + $0x1f0] sm:$0xff] %v2512_v48 }
 0x1fb   :  { %v2516_v57 = vpop.eup %2515  ;;  %1829 = vst [vmem:[%s3386_s3 + $0x1e0] sm:$0xff] %v2514_v5 }
 0x1fc   :  { %v2518_v34 = vpop.eup %2517  ;;  %1816 = vst [vmem:[%s3386_s3 + $0x178] sm:$0xff] %v2516_v57 }
 0x1fd   :  { %v2520_v62 = vpop.eup %2519  ;;  %1832 = vst [vmem:[%s3386_s3 + $0x1f8] sm:$0xff] %v2518_v34 }
 0x1fe   :  { %1830 = vst [vmem:[%s3386_s3 + $0x1e8] sm:$0xff] %v2520_v62 }

</bundles_post_ra>
